<compile_context>
chip_gen: v5e
topology: v5e:2x2
jax: 0.10.0
libtpu: 0.0.40
codegen_flags: <defaults>
</compile_context>

<pallas_src>
import functools

import jax
import jax.numpy as jnp
from jax.experimental import pallas as pl
from jax.experimental.pallas import tpu as pltpu

LEAKY_SLOPE = 0.01   # F.leaky_relu default negative_slope
EPS = 1e-6           # instance_norm_layer default epsilon in the module
LANE = 128


def _leaky_relu(x):
    return jnp.where(x > 0, x, LEAKY_SLOPE * x)


def _round_up(x, m):
    return (x + m - 1) // m * m


def _downsample_kernel(x_ref, w_ref, b_ref, g_ref, beta_ref, o_ref, *,
                       kh, kw, sh, sw, hout, wout, cin):
    """One (batch, cout_tile) grid point.

    x_ref   : (1, sh*sw, Hq, Wq, Cin)  phase-split zero-padded input (bf16)
    w_ref   : (kh*kw, Cin, Ct)         per-tap conv weights (bf16, Cout-padded)
    b_ref   : (1, Ct)                  conv bias (f32, zero-padded)
    g_ref   : (1, Ct)                  instance-norm gamma (f32, one-padded)
    beta_ref: (1, Ct)                  instance-norm beta (f32, zero-padded)
    o_ref   : (1, P, Ct)               P = hout * wout (lane-dense Ct)
    """
    p = hout * wout
    ct = o_ref.shape[-1]

    # --- conv as accumulation of kh*kw shifted matmuls (fused im2col) -------
    acc = jnp.zeros((p, ct), jnp.float32)
    for dy in range(kh):
        for dx in range(kw):
            phase = (dy % sh) * sw + (dx % sw)
            tap = x_ref[0, phase,
                        dy // sh: dy // sh + hout,
                        dx // sw: dx // sw + wout, :]        # (hout, wout, cin) bf16
            tap = tap.reshape(p, cin)                         # (P, Cin)
            w_tap = w_ref[dy * kw + dx]                       # (Cin, Ct) bf16
            acc = acc + jnp.dot(tap, w_tap,
                                preferred_element_type=jnp.float32)

    # conv bias + leaky relu (f32)
    h = _leaky_relu(acc + b_ref[...])                         # (P, Ct)

    # --- InstanceNorm2d (biased variance), single-pass sum / sum-of-squares --
    inv_p = 1.0 / p
    s1 = jnp.sum(h, axis=0, keepdims=True)                    # (1, Ct)
    s2 = jnp.sum(h * h, axis=0, keepdims=True)                # (1, Ct)
    mean = s1 * inv_p
    var = jnp.maximum(s2 * inv_p - mean * mean, 0.0)
    hn = (h - mean) * jax.lax.rsqrt(var + EPS)
    hn = hn * g_ref[...] + beta_ref[...]
    hn = _leaky_relu(hn)

    # GLU.  The reference module calls the SAME conv2d_layer / instance_norm
    # instances for the gate branch, so the gate equals the main branch and is
    # computed once.
    # TODO(synk): a variant with independent gate conv/norm parameters would
    # add a second weight set reusing the same tap slices / matmul structure.
    out = hn * jax.nn.sigmoid(hn)

    o_ref[0] = out.astype(o_ref.dtype)


@functools.partial(jax.jit, static_argnames=("kernel_size", "strides"))
def downsample2d_block(x_nchw, weight, bias, gamma, beta, *, kernel_size, strides):
    """x_nchw: (N, Cin, H, W); weight: (Cout, Cin, kh, kw); bias/gamma/beta: (Cout,)."""
    kh, kw = kernel_size
    sh, sw = strides
    ph, pw = (kh - 1) // 2, (kw - 1) // 2

    n, cin, h, w = x_nchw.shape
    cout = weight.shape[0]

    hout = (h + 2 * ph - kh) // sh + 1
    wout = (w + 2 * pw - kw) // sw + 1
    p = hout * wout

    # --- phase-split padded input: (N, sh*sw, Hq, Wq, Cin), bf16 -------------
    # Splitting the padded input by (row % sh, col % sw) makes every conv tap a
    # *contiguous* static slice inside the kernel -> fused im2col, no strided
    # lane reads, and only ~1x input bytes moved through HBM.
    hq = -(-(h + 2 * ph) // sh)
    wq = -(-(w + 2 * pw) // sw)
    hp2, wp2 = hq * sh, wq * sw
    xp = jnp.pad(x_nchw, ((0, 0), (0, 0),
                          (ph, hp2 - h - ph), (pw, wp2 - w - pw)))
    x_phases = (xp.reshape(n, cin, hq, sh, wq, sw)
                  .transpose(0, 3, 5, 2, 4, 1)                 # (N, sh, sw, Hq, Wq, Cin)
                  .reshape(n, sh * sw, hq, wq, cin)
                  .astype(jnp.bfloat16))

    # --- weights: (Cout, Cin, kh, kw) -> (kh*kw, Cin, Cout_pad), bf16 --------
    cout_pad = _round_up(cout, LANE)
    ct = LANE                                                  # lane-dense Cout tile
    w_t = jnp.transpose(weight, (2, 3, 1, 0)).reshape(kh * kw, cin, cout)
    w_pad = jnp.pad(w_t, ((0, 0), (0, 0), (0, cout_pad - cout))).astype(jnp.bfloat16)

    def _pad_row(v, fill):
        return jnp.pad(v.astype(jnp.float32).reshape(1, cout),
                       ((0, 0), (0, cout_pad - cout)), constant_values=fill)

    b_row = _pad_row(bias, 0.0)
    g_row = _pad_row(gamma, 1.0)   # padded channels: gamma=1, beta=0 -> exact zeros
    beta_row = _pad_row(beta, 0.0)

    kernel = functools.partial(_downsample_kernel, kh=kh, kw=kw, sh=sh, sw=sw,
                               hout=hout, wout=wout, cin=cin)

    # TODO(synk): for very large spatial extents (v7x 64 MiB VMEM), tile the P
    # axis with a two-pass InstanceNorm (accumulate sum/sumsq over an
    # 'arbitrary' P axis, then normalize); not needed at these block sizes.
    out = pl.pallas_call(
        kernel,
        out_shape=jax.ShapeDtypeStruct((n, p, cout_pad), jnp.float32),
        grid_spec=pltpu.PrefetchScalarGridSpec(
            num_scalar_prefetch=0,
            grid=(n, cout_pad // ct),
            in_specs=[
                pl.BlockSpec((1, sh * sw, hq, wq, cin),
                             lambda b, j: (b, 0, 0, 0, 0)),
                pl.BlockSpec((kh * kw, cin, ct), lambda b, j: (0, 0, j)),
                pl.BlockSpec((1, ct), lambda b, j: (0, j)),
                pl.BlockSpec((1, ct), lambda b, j: (0, j)),
                pl.BlockSpec((1, ct), lambda b, j: (0, j)),
            ],
            out_specs=pl.BlockSpec((1, p, ct), lambda b, j: (b, 0, j)),
        ),
        compiler_params=pltpu.CompilerParams(
            dimension_semantics=("parallel", "parallel"),
            vmem_limit_bytes=64 * 1024 * 1024,
        ),
    )(x_phases, w_pad, b_row, g_row, beta_row)

    # (N, P, Cout_pad) -> strip channel padding -> NCHW
    out = out[:, :, :cout].reshape(n, hout, wout, cout)
    return jnp.transpose(out, (0, 3, 1, 2))


if __name__ == "__main__":
    key = jax.random.PRNGKey(0)
    k_x, k_w, k_b = jax.random.split(key, 3)

    N, Cin, H, W = 2, 4, 16, 16
    Cout = 8
    kernel_size = (3, 3)
    strides = (2, 2)

    x = jax.random.normal(k_x, (N, Cin, H, W), dtype=jnp.float32)
    fan_in = Cin * kernel_size[0] * kernel_size[1]
    weight = jax.random.normal(k_w, (Cout, Cin, *kernel_size),
                               dtype=jnp.float32) / jnp.sqrt(fan_in)
    bias = jax.random.normal(k_b, (Cout,), dtype=jnp.float32) * 0.1
    gamma = jnp.ones((Cout,), dtype=jnp.float32)   # InstanceNorm weight init
    beta = jnp.zeros((Cout,), dtype=jnp.float32)   # InstanceNorm bias init

    out = downsample2d_block(x, weight, bias, gamma, beta,
                             kernel_size=kernel_size, strides=strides)
    jax.block_until_ready(out)
    assert out.shape == (N, Cout, H // strides[0], W // strides[1]), out.shape
    assert bool(jnp.all(jnp.isfinite(out)))
    print("KERNEL_OK")
</pallas_src>

<mosaic_0001>
module attributes {stable_mosaic.version = 11 : i64} {
  func.func @_downsample_kernel(%arg0: i32, %arg1: i32, %arg2: memref<1x4x9x9x4xbf16, #tpu.memory_space<vmem>>, %arg3: memref<9x4x128xbf16, #tpu.memory_space<vmem>>, %arg4: memref<1x128xf32, #tpu.memory_space<vmem>>, %arg5: memref<1x128xf32, #tpu.memory_space<vmem>>, %arg6: memref<1x128xf32, #tpu.memory_space<vmem>>, %arg7: memref<1x64x128xf32, #tpu.memory_space<vmem>>) attributes {dimension_semantics = [#tpu.dimension_semantics<parallel>, #tpu.dimension_semantics<parallel>], iteration_bounds = array<i64: 2, 1>, scalar_prefetch = 0 : i64, scratch_operands = 0 : i64, tpu.core_type = #tpu.core_type<tc>, window_params = [{transform_indices = @transform_0, window_bounds = array<i64: 1, 4, 9, 9, 4>}, {transform_indices = @transform_1, window_bounds = array<i64: 9, 4, 128>}, {transform_indices = @transform_2, window_bounds = array<i64: 1, 128>}, {transform_indices = @transform_3, window_bounds = array<i64: 1, 128>}, {transform_indices = @transform_4, window_bounds = array<i64: 1, 128>}, {transform_indices = @transform_5, window_bounds = array<i64: 1, 64, 128>}]} {
    %cst = arith.constant 0.000000e+00 : f32
    %0 = vector.broadcast %cst : f32 to vector<64x128xf32>
    %c0 = arith.constant 0 : index
    %c0_0 = arith.constant 0 : index
    %c0_1 = arith.constant 0 : index
    %c0_2 = arith.constant 0 : index
    %c0_3 = arith.constant 0 : index
    %1 = vector.load %arg2[%c0, %c0_0, %c0_1, %c0_2, %c0_3] : memref<1x4x9x9x4xbf16, #tpu.memory_space<vmem>>, vector<1x1x8x8x4xbf16>
    %2 = vector.shape_cast %1 : vector<1x1x8x8x4xbf16> to vector<8x8x4xbf16>
    %3 = vector.shape_cast %2 : vector<8x8x4xbf16> to vector<64x4xbf16>
    %c0_4 = arith.constant 0 : index
    %c0_5 = arith.constant 0 : index
    %c0_6 = arith.constant 0 : index
    %4 = vector.load %arg3[%c0_4, %c0_5, %c0_6] : memref<9x4x128xbf16, #tpu.memory_space<vmem>>, vector<1x4x128xbf16>
    %5 = vector.shape_cast %4 : vector<1x4x128xbf16> to vector<4x128xbf16>
    %cst_7 = arith.constant dense<0.000000e+00> : vector<64x128xf32>
    %6 = tpu.matmul %3, %5, %cst_7 {dimension_numbers = #tpu.dot_dimension_numbers<[1], [0], [0], [1], [0, 0, 1, 1], [], []>} : vector<64x4xbf16>, vector<4x128xbf16>, vector<64x128xf32> -> vector<64x128xf32>
    %7 = arith.addf %0, %6 : vector<64x128xf32>
    %c0_8 = arith.constant 0 : index
    %c1 = arith.constant 1 : index
    %c0_9 = arith.constant 0 : index
    %c0_10 = arith.constant 0 : index
    %c0_11 = arith.constant 0 : index
    %8 = vector.load %arg2[%c0_8, %c1, %c0_9, %c0_10, %c0_11] : memref<1x4x9x9x4xbf16, #tpu.memory_space<vmem>>, vector<1x1x8x8x4xbf16>
    %9 = vector.shape_cast %8 : vector<1x1x8x8x4xbf16> to vector<8x8x4xbf16>
    %10 = vector.shape_cast %9 : vector<8x8x4xbf16> to vector<64x4xbf16>
    %c1_12 = arith.constant 1 : index
    %c0_13 = arith.constant 0 : index
    %c0_14 = arith.constant 0 : index
    %11 = vector.load %arg3[%c1_12, %c0_13, %c0_14] : memref<9x4x128xbf16, #tpu.memory_space<vmem>>, vector<1x4x128xbf16>
    %12 = vector.shape_cast %11 : vector<1x4x128xbf16> to vector<4x128xbf16>
    %cst_15 = arith.constant dense<0.000000e+00> : vector<64x128xf32>
    %13 = tpu.matmul %10, %12, %cst_15 {dimension_numbers = #tpu.dot_dimension_numbers<[1], [0], [0], [1], [0, 0, 1, 1], [], []>} : vector<64x4xbf16>, vector<4x128xbf16>, vector<64x128xf32> -> vector<64x128xf32>
    %14 = arith.addf %7, %13 : vector<64x128xf32>
    %c0_16 = arith.constant 0 : index
    %c0_17 = arith.constant 0 : index
    %c0_18 = arith.constant 0 : index
    %c1_19 = arith.constant 1 : index
    %c0_20 = arith.constant 0 : index
    %15 = vector.load %arg2[%c0_16, %c0_17, %c0_18, %c1_19, %c0_20] : memref<1x4x9x9x4xbf16, #tpu.memory_space<vmem>>, vector<1x1x8x8x4xbf16>
    %16 = vector.shape_cast %15 : vector<1x1x8x8x4xbf16> to vector<8x8x4xbf16>
    %17 = vector.shape_cast %16 : vector<8x8x4xbf16> to vector<64x4xbf16>
    %c2 = arith.constant 2 : index
    %c0_21 = arith.constant 0 : index
    %c0_22 = arith.constant 0 : index
    %18 = vector.load %arg3[%c2, %c0_21, %c0_22] : memref<9x4x128xbf16, #tpu.memory_space<vmem>>, vector<1x4x128xbf16>
    %19 = vector.shape_cast %18 : vector<1x4x128xbf16> to vector<4x128xbf16>
    %cst_23 = arith.constant dense<0.000000e+00> : vector<64x128xf32>
    %20 = tpu.matmul %17, %19, %cst_23 {dimension_numbers = #tpu.dot_dimension_numbers<[1], [0], [0], [1], [0, 0, 1, 1], [], []>} : vector<64x4xbf16>, vector<4x128xbf16>, vector<64x128xf32> -> vector<64x128xf32>
    %21 = arith.addf %14, %20 : vector<64x128xf32>
    %c0_24 = arith.constant 0 : index
    %c2_25 = arith.constant 2 : index
    %c0_26 = arith.constant 0 : index
    %c0_27 = arith.constant 0 : index
    %c0_28 = arith.constant 0 : index
    %22 = vector.load %arg2[%c0_24, %c2_25, %c0_26, %c0_27, %c0_28] : memref<1x4x9x9x4xbf16, #tpu.memory_space<vmem>>, vector<1x1x8x8x4xbf16>
    %23 = vector.shape_cast %22 : vector<1x1x8x8x4xbf16> to vector<8x8x4xbf16>
    %24 = vector.shape_cast %23 : vector<8x8x4xbf16> to vector<64x4xbf16>
    %c3 = arith.constant 3 : index
    %c0_29 = arith.constant 0 : index
    %c0_30 = arith.constant 0 : index
    %25 = vector.load %arg3[%c3, %c0_29, %c0_30] : memref<9x4x128xbf16, #tpu.memory_space<vmem>>, vector<1x4x128xbf16>
    %26 = vector.shape_cast %25 : vector<1x4x128xbf16> to vector<4x128xbf16>
    %cst_31 = arith.constant dense<0.000000e+00> : vector<64x128xf32>
    %27 = tpu.matmul %24, %26, %cst_31 {dimension_numbers = #tpu.dot_dimension_numbers<[1], [0], [0], [1], [0, 0, 1, 1], [], []>} : vector<64x4xbf16>, vector<4x128xbf16>, vector<64x128xf32> -> vector<64x128xf32>
    %28 = arith.addf %21, %27 : vector<64x128xf32>
    %c0_32 = arith.constant 0 : index
    %c3_33 = arith.constant 3 : index
    %c0_34 = arith.constant 0 : index
    %c0_35 = arith.constant 0 : index
    %c0_36 = arith.constant 0 : index
    %29 = vector.load %arg2[%c0_32, %c3_33, %c0_34, %c0_35, %c0_36] : memref<1x4x9x9x4xbf16, #tpu.memory_space<vmem>>, vector<1x1x8x8x4xbf16>
    %30 = vector.shape_cast %29 : vector<1x1x8x8x4xbf16> to vector<8x8x4xbf16>
    %31 = vector.shape_cast %30 : vector<8x8x4xbf16> to vector<64x4xbf16>
    %c4 = arith.constant 4 : index
    %c0_37 = arith.constant 0 : index
    %c0_38 = arith.constant 0 : index
    %32 = vector.load %arg3[%c4, %c0_37, %c0_38] : memref<9x4x128xbf16, #tpu.memory_space<vmem>>, vector<1x4x128xbf16>
    %33 = vector.shape_cast %32 : vector<1x4x128xbf16> to vector<4x128xbf16>
    %cst_39 = arith.constant dense<0.000000e+00> : vector<64x128xf32>
    %34 = tpu.matmul %31, %33, %cst_39 {dimension_numbers = #tpu.dot_dimension_numbers<[1], [0], [0], [1], [0, 0, 1, 1], [], []>} : vector<64x4xbf16>, vector<4x128xbf16>, vector<64x128xf32> -> vector<64x128xf32>
    %35 = arith.addf %28, %34 : vector<64x128xf32>
    %c0_40 = arith.constant 0 : index
    %c2_41 = arith.constant 2 : index
    %c0_42 = arith.constant 0 : index
    %c1_43 = arith.constant 1 : index
    %c0_44 = arith.constant 0 : index
    %36 = vector.load %arg2[%c0_40, %c2_41, %c0_42, %c1_43, %c0_44] : memref<1x4x9x9x4xbf16, #tpu.memory_space<vmem>>, vector<1x1x8x8x4xbf16>
    %37 = vector.shape_cast %36 : vector<1x1x8x8x4xbf16> to vector<8x8x4xbf16>
    %38 = vector.shape_cast %37 : vector<8x8x4xbf16> to vector<64x4xbf16>
    %c5 = arith.constant 5 : index
    %c0_45 = arith.constant 0 : index
    %c0_46 = arith.constant 0 : index
    %39 = vector.load %arg3[%c5, %c0_45, %c0_46] : memref<9x4x128xbf16, #tpu.memory_space<vmem>>, vector<1x4x128xbf16>
    %40 = vector.shape_cast %39 : vector<1x4x128xbf16> to vector<4x128xbf16>
    %cst_47 = arith.constant dense<0.000000e+00> : vector<64x128xf32>
    %41 = tpu.matmul %38, %40, %cst_47 {dimension_numbers = #tpu.dot_dimension_numbers<[1], [0], [0], [1], [0, 0, 1, 1], [], []>} : vector<64x4xbf16>, vector<4x128xbf16>, vector<64x128xf32> -> vector<64x128xf32>
    %42 = arith.addf %35, %41 : vector<64x128xf32>
    %c0_48 = arith.constant 0 : index
    %c0_49 = arith.constant 0 : index
    %c1_50 = arith.constant 1 : index
    %c0_51 = arith.constant 0 : index
    %c0_52 = arith.constant 0 : index
    %43 = vector.load %arg2[%c0_48, %c0_49, %c1_50, %c0_51, %c0_52] : memref<1x4x9x9x4xbf16, #tpu.memory_space<vmem>>, vector<1x1x8x8x4xbf16>
    %44 = vector.shape_cast %43 : vector<1x1x8x8x4xbf16> to vector<8x8x4xbf16>
    %45 = vector.shape_cast %44 : vector<8x8x4xbf16> to vector<64x4xbf16>
    %c6 = arith.constant 6 : index
    %c0_53 = arith.constant 0 : index
    %c0_54 = arith.constant 0 : index
    %46 = vector.load %arg3[%c6, %c0_53, %c0_54] : memref<9x4x128xbf16, #tpu.memory_space<vmem>>, vector<1x4x128xbf16>
    %47 = vector.shape_cast %46 : vector<1x4x128xbf16> to vector<4x128xbf16>
    %cst_55 = arith.constant dense<0.000000e+00> : vector<64x128xf32>
    %48 = tpu.matmul %45, %47, %cst_55 {dimension_numbers = #tpu.dot_dimension_numbers<[1], [0], [0], [1], [0, 0, 1, 1], [], []>} : vector<64x4xbf16>, vector<4x128xbf16>, vector<64x128xf32> -> vector<64x128xf32>
    %49 = arith.addf %42, %48 : vector<64x128xf32>
    %c0_56 = arith.constant 0 : index
    %c1_57 = arith.constant 1 : index
    %c1_58 = arith.constant 1 : index
    %c0_59 = arith.constant 0 : index
    %c0_60 = arith.constant 0 : index
    %50 = vector.load %arg2[%c0_56, %c1_57, %c1_58, %c0_59, %c0_60] : memref<1x4x9x9x4xbf16, #tpu.memory_space<vmem>>, vector<1x1x8x8x4xbf16>
    %51 = vector.shape_cast %50 : vector<1x1x8x8x4xbf16> to vector<8x8x4xbf16>
    %52 = vector.shape_cast %51 : vector<8x8x4xbf16> to vector<64x4xbf16>
    %c7 = arith.constant 7 : index
    %c0_61 = arith.constant 0 : index
    %c0_62 = arith.constant 0 : index
    %53 = vector.load %arg3[%c7, %c0_61, %c0_62] : memref<9x4x128xbf16, #tpu.memory_space<vmem>>, vector<1x4x128xbf16>
    %54 = vector.shape_cast %53 : vector<1x4x128xbf16> to vector<4x128xbf16>
    %cst_63 = arith.constant dense<0.000000e+00> : vector<64x128xf32>
    %55 = tpu.matmul %52, %54, %cst_63 {dimension_numbers = #tpu.dot_dimension_numbers<[1], [0], [0], [1], [0, 0, 1, 1], [], []>} : vector<64x4xbf16>, vector<4x128xbf16>, vector<64x128xf32> -> vector<64x128xf32>
    %56 = arith.addf %49, %55 : vector<64x128xf32>
    %c0_64 = arith.constant 0 : index
    %c0_65 = arith.constant 0 : index
    %c1_66 = arith.constant 1 : index
    %c1_67 = arith.constant 1 : index
    %c0_68 = arith.constant 0 : index
    %57 = vector.load %arg2[%c0_64, %c0_65, %c1_66, %c1_67, %c0_68] : memref<1x4x9x9x4xbf16, #tpu.memory_space<vmem>>, vector<1x1x8x8x4xbf16>
    %58 = vector.shape_cast %57 : vector<1x1x8x8x4xbf16> to vector<8x8x4xbf16>
    %59 = vector.shape_cast %58 : vector<8x8x4xbf16> to vector<64x4xbf16>
    %c8 = arith.constant 8 : index
    %c0_69 = arith.constant 0 : index
    %c0_70 = arith.constant 0 : index
    %60 = vector.load %arg3[%c8, %c0_69, %c0_70] : memref<9x4x128xbf16, #tpu.memory_space<vmem>>, vector<1x4x128xbf16>
    %61 = vector.shape_cast %60 : vector<1x4x128xbf16> to vector<4x128xbf16>
    %cst_71 = arith.constant dense<0.000000e+00> : vector<64x128xf32>
    %62 = tpu.matmul %59, %61, %cst_71 {dimension_numbers = #tpu.dot_dimension_numbers<[1], [0], [0], [1], [0, 0, 1, 1], [], []>} : vector<64x4xbf16>, vector<4x128xbf16>, vector<64x128xf32> -> vector<64x128xf32>
    %63 = arith.addf %56, %62 : vector<64x128xf32>
    %c0_72 = arith.constant 0 : index
    %c0_73 = arith.constant 0 : index
    %64 = vector.load %arg4[%c0_72, %c0_73] : memref<1x128xf32, #tpu.memory_space<vmem>>, vector<1x128xf32>
    %65 = vector.broadcast %64 : vector<1x128xf32> to vector<64x128xf32>
    %66 = arith.addf %63, %65 : vector<64x128xf32>
    %cst_74 = arith.constant 0.000000e+00 : f32
    %67 = vector.broadcast %cst_74 : f32 to vector<64x128xf32>
    %68 = arith.cmpf ogt, %66, %67 : vector<64x128xf32>
    %cst_75 = arith.constant 0.00999999977 : f32
    %69 = vector.broadcast %cst_75 : f32 to vector<64x128xf32>
    %70 = arith.mulf %69, %66 : vector<64x128xf32>
    %71 = arith.select %68, %66, %70 : vector<64x128xi1>, vector<64x128xf32>
    %cst_76 = arith.constant dense<0.000000e+00> : vector<128xf32>
    %72 = vector.multi_reduction <add>, %71, %cst_76 [0] : vector<64x128xf32> to vector<128xf32>
    %73 = vector.shape_cast %72 : vector<128xf32> to vector<1x128xf32>
    %74 = arith.mulf %71, %71 : vector<64x128xf32>
    %cst_77 = arith.constant dense<0.000000e+00> : vector<128xf32>
    %75 = vector.multi_reduction <add>, %74, %cst_77 [0] : vector<64x128xf32> to vector<128xf32>
    %76 = vector.shape_cast %75 : vector<128xf32> to vector<1x128xf32>
    %cst_78 = arith.constant 1.562500e-02 : f32
    %77 = vector.broadcast %cst_78 : f32 to vector<1x128xf32>
    %78 = arith.mulf %73, %77 : vector<1x128xf32>
    %cst_79 = arith.constant 1.562500e-02 : f32
    %79 = vector.broadcast %cst_79 : f32 to vector<1x128xf32>
    %80 = arith.mulf %76, %79 : vector<1x128xf32>
    %81 = arith.mulf %78, %78 : vector<1x128xf32>
    %82 = arith.subf %80, %81 : vector<1x128xf32>
    %cst_80 = arith.constant 0.000000e+00 : f32
    %83 = vector.broadcast %cst_80 : f32 to vector<1x128xf32>
    %84 = arith.maximumf %82, %83 : vector<1x128xf32>
    %85 = vector.broadcast %78 : vector<1x128xf32> to vector<64x128xf32>
    %86 = arith.subf %71, %85 : vector<64x128xf32>
    %cst_81 = arith.constant 9.99999997E-7 : f32
    %87 = vector.broadcast %cst_81 : f32 to vector<1x128xf32>
    %88 = arith.addf %84, %87 : vector<1x128xf32>
    %89 = math.rsqrt %88 : vector<1x128xf32>
    %90 = vector.broadcast %89 : vector<1x128xf32> to vector<64x128xf32>
    %91 = arith.mulf %86, %90 : vector<64x128xf32>
    %c0_82 = arith.constant 0 : index
    %c0_83 = arith.constant 0 : index
    %92 = vector.load %arg5[%c0_82, %c0_83] : memref<1x128xf32, #tpu.memory_space<vmem>>, vector<1x128xf32>
    %93 = vector.broadcast %92 : vector<1x128xf32> to vector<64x128xf32>
    %94 = arith.mulf %91, %93 : vector<64x128xf32>
    %c0_84 = arith.constant 0 : index
    %c0_85 = arith.constant 0 : index
    %95 = vector.load %arg6[%c0_84, %c0_85] : memref<1x128xf32, #tpu.memory_space<vmem>>, vector<1x128xf32>
    %96 = vector.broadcast %95 : vector<1x128xf32> to vector<64x128xf32>
    %97 = arith.addf %94, %96 : vector<64x128xf32>
    %cst_86 = arith.constant 0.000000e+00 : f32
    %98 = vector.broadcast %cst_86 : f32 to vector<64x128xf32>
    %99 = arith.cmpf ogt, %97, %98 : vector<64x128xf32>
    %cst_87 = arith.constant 0.00999999977 : f32
    %100 = vector.broadcast %cst_87 : f32 to vector<64x128xf32>
    %101 = arith.mulf %100, %97 : vector<64x128xf32>
    %102 = arith.select %99, %97, %101 : vector<64x128xi1>, vector<64x128xf32>
    %103 = arith.negf %102 : vector<64x128xf32>
    %104 = math.exp %103 : vector<64x128xf32>
    %cst_88 = arith.constant 1.000000e+00 : f32
    %105 = vector.broadcast %cst_88 : f32 to vector<64x128xf32>
    %106 = arith.addf %105, %104 : vector<64x128xf32>
    %107 = arith.divf %105, %106 : vector<64x128xf32>
    %108 = arith.mulf %102, %107 : vector<64x128xf32>
    %c0_89 = arith.constant 0 : index
    %c0_90 = arith.constant 0 : index
    %c0_91 = arith.constant 0 : index
    %109 = vector.load %arg7[%c0_89, %c0_90, %c0_91] : memref<1x64x128xf32, #tpu.memory_space<vmem>>, vector<1x64x128xf32>
    %110 = vector.shape_cast %109 : vector<1x64x128xf32> to vector<64x128xf32>
    %111 = vector.shape_cast %108 : vector<64x128xf32> to vector<1x64x128xf32>
    tpu.vector_store %arg7[%c0_89, %c0_90, %c0_91], %111 {strides = array<i32>} : memref<1x64x128xf32, #tpu.memory_space<vmem>>, vector<1x64x128xf32>,
    return
  }
  func.func @transform_0(%arg0: i32, %arg1: i32) -> (i32, i32, i32, i32, i32) {
    %c0_i32 = arith.constant 0 : i32
    %c0_i32_0 = arith.constant 0 : i32
    %c0_i32_1 = arith.constant 0 : i32
    %c0_i32_2 = arith.constant 0 : i32
    %c0_i32_3 = arith.constant 0 : i32
    return %arg0, %c0_i32, %c0_i32_0, %c0_i32_1, %c0_i32_2 : i32, i32, i32, i32, i32
  }
  func.func @transform_1(%arg0: i32, %arg1: i32) -> (i32, i32, i32) {
    %c0_i32 = arith.constant 0 : i32
    %c0_i32_0 = arith.constant 0 : i32
    %c0_i32_1 = arith.constant 0 : i32
    return %c0_i32, %c0_i32_0, %arg1 : i32, i32, i32
  }
  func.func @transform_2(%arg0: i32, %arg1: i32) -> (i32, i32) {
    %c0_i32 = arith.constant 0 : i32
    %c0_i32_0 = arith.constant 0 : i32
    return %c0_i32, %arg1 : i32, i32
  }
  func.func @transform_3(%arg0: i32, %arg1: i32) -> (i32, i32) {
    %c0_i32 = arith.constant 0 : i32
    %c0_i32_0 = arith.constant 0 : i32
    return %c0_i32, %arg1 : i32, i32
  }
  func.func @transform_4(%arg0: i32, %arg1: i32) -> (i32, i32) {
    %c0_i32 = arith.constant 0 : i32
    %c0_i32_0 = arith.constant 0 : i32
    return %c0_i32, %arg1 : i32, i32
  }
  func.func @transform_5(%arg0: i32, %arg1: i32) -> (i32, i32, i32) {
    %c0_i32 = arith.constant 0 : i32
    %c0_i32_0 = arith.constant 0 : i32
    return %arg0, %c0_i32, %arg1 : i32, i32, i32
  }
}

</mosaic_0001>

<bundles_post_ra>
// kernel: downsample2d_block.1
= control target key start
LH: loop header
LB: loop body
LE: loop exit
PB: predicated region body
PF: predicated region fallthrough
CT: control target
= control target key end

     0   :  { %s2197_s18 = smov 0   ;;  %s2199_s19 = smov 0   ;;  %s2729_s0 = inlined_call_operand.vmem [shape: bf16[2,4,9,9,4], index: 0, kind: input, shape index: {}]   ;;  %s2730_s1 = inlined_call_operand.vmem [shape: bf16[9,4,128], index: 1, kind: input, shape index: {}]   ;;  %s2731_s2 = inlined_call_operand.vmem [shape: f32[1,128], index: 2, kind: input, shape index: {}]   ;;  %s2732_s3 = inlined_call_operand.vmem [shape: f32[1,128], index: 3, kind: input, shape index: {}]   ;;  %s2733_s4 = inlined_call_operand.vmem [shape: f32[1,128], index: 4, kind: input, shape index: {}]   ;;  %s2734_s5 = inlined_call_operand.vmem [shape: f32[2,64,128], index: 5, kind: output, shape index: {}]  }
   0x1   :  { %s2201_s20 = smov 0  }
   0x2 LB: > { %s27_s21 = sadd.s32 1, %s2161_s19  ;;  %p1827_p0 = scmp.ge.s32.totalorder %s2165_s20, 1  ;;  %s2165_s20 = sphi %s2201_s20, %s15_s20   ;;  %s2161_s19 = sphi %s2199_s19, %s2754_s19   ;;  %s2157_s18 = sphi %s2197_s18, %s2753_s18  }
   0x3   : > { %p29_p1 = scmp.ge.s32.totalorder %s27_s21, 2  ;;  %p234_p2 = scmp.lt.s32.totalorder %s2165_s20, 3 }
   0x5   : > { %s2756_s21 = smov (%p29_p1, %s27_s21), 0  ;;  %p235_p3 = pnand %p1827_p0, %p234_p2 }
   0x6   : > { %p278_p4 = scmp.lt.s32.totalorder (!%p235_p3), %s2157_s18, 1 }
   0x7   : > { %238 = sbr.rel (%p235_p3) target bundleno = 402 (0x192), region = 40 }
   0xc   : > { %v1839_v0 = vld [vmem:[%s2730_s1 + $0x2] sm:$0x3]  ;;  %vm358_vm0 = vcmask 1041408   ;;  %v1880_v2 = vld [vmem:[%s2730_s1 + $0x4] sm:$0x3]  ;;  %s2758_s18 = smov (!%p278_p4, %s2157_s18), 1 }
   0xd   : > { %v360_v1 = vsel %vm358_vm0, %v1839_v0, 0  ;;  %v1893_v3 = vld [vmem:[%s2730_s1 + $0x6] sm:$0x3]  ;;  %v613_v4 = vsel %vm358_vm0, %v1880_v2, 0  ;;  %v313_v6 = vld [vmem:[%s2730_s1] sm:$0x3] }
   0xe   : > { %2078 = vmatpush.bf16.msra.mxu1 %v360_v1  ;;  %2079 = vmatpush.bf16.msra.mxu2 %v360_v1  ;;  %v696_v5 = vsel %vm358_vm0, %v1893_v3, 0  ;;  %v424_v7 = vsel %vm358_vm0, %v313_v6, 0  ;;  %v1922_v8 = vld [vmem:[%s2730_s1 + $0x8] sm:$0x3]  ;;  %s2081_s7 = smul.u32 288, %s2758_s18  ;;  %vm345_vm1 = vcmask 31744  }
   0xf   : > { %2080 = vmatpush.bf16.msra.mxu3 %v360_v1  ;;  %369 = vmatpush.bf16.msra.mxu0 %v360_v1  ;;  %v779_v9 = vsel %vm358_vm0, %v1922_v8, 0  ;;  %v1972_v10 = vld [vmem:[%s2730_s1 + $0xc] sm:$0x3]  ;;  %v2001_v11 = vld [vmem:[%s2730_s1 + $0xe] sm:$0x3]  ;;  %s2053_s29 = sshll.u32 %s2758_s18, 6 }
  0x10   : > { %s2244_s12 = scalar_lea.vmem %s2729_s0, %s2081_s7  ;;  %v1959_v12 = vld [vmem:[%s2730_s1 + $0xa] sm:$0x3]  ;;  %v1056_v24 = vsel %vm358_vm0, %v1972_v10, 0  ;;  %v1139_v28 = vsel %vm358_vm0, %v2001_v11, 0  ;;  %v2038_v38 = vld [vmem:[%s2730_s1 + $0x10] sm:$0x3]  ;;  %s2691_s6 = scalar_lea.vmem %s2734_s5, %s2053_s29 }
  0x11   : > { %v1846_v13 = vld [vmem:[%s2244_s12 + $0x58] sm:$0xf]  ;;  %v2059_v14 = vld [vmem:[%s2244_s12 + $0x5c] sm:$0xf0]  ;;  %v1850_v15 = vld [vmem:[%s2244_s12 + $0x68] sm:$0xf] }
  0x12   : > { %622 = vmatpush.bf16.msrb.mxu2 %v613_v4  ;;  %433 = vmatpush.bf16.msrb.mxu1 %v424_v7  ;;  %v1847_v16 = vor.u32 %v2059_v14, %v1846_v13  ;;  %v2060_v17 = vld [vmem:[%s2244_s12 + $0x6c] sm:$0xf0]  ;;  %v1854_v18 = vld [vmem:[%s2244_s12 + $0x78] sm:$0xf]  ;;  %v2061_v19 = vld [vmem:[%s2244_s12 + $0x7c] sm:$0xf0] }
  0x13   : > { %705 = vmatpush.bf16.msrb.mxu3 %v696_v5  ;;  %788 = vmatpush.bf16.msrb.mxu0 %v779_v9  ;;  %v1851_v20 = vor.u32 %v2060_v17, %v1850_v15  ;;  %v1855_v21 = vor.u32 %v2061_v19, %v1854_v18  ;;  %v1842_v22 = vld [vmem:[%s2244_s12 + $0x48] sm:$0xf]  ;;  %v2058_v23 = vld [vmem:[%s2244_s12 + $0x4c] sm:$0xf0]  ;;  %v455_v26 = vld [vmem:[%s2244_s12] sm:$0xf] }
  0x14   : > { %1857 = vmatmul.msk.bf16.vlgmr.msra.gmra.mxu1 %vm345_vm1, %v1847_v16  ;;  %v1843_v25 = vor.u32 %v2058_v23, %v1842_v22  ;;  %v456_v27 = vld [vmem:[%s2244_s12 + $0x4] sm:$0x1]  ;;  %v973_v29 = vsel %vm358_vm0, %v1959_v12, 0  ;;  %v457_v30 = vld [vmem:[%s2244_s12 + $0x8] sm:$0xf]  ;;  %v475_v32 = vshrl.u32 %v455_v26, 16 }
  0x15   : > { %1858 = vmatmul.msk.bf16.vlgmr.msra.gmra.mxu2 %vm345_vm1, %v1851_v20  ;;  %1859 = vmatmul.msk.bf16.vlgmr.msra.gmra.mxu3 %vm345_vm1, %v1855_v21  ;;  %v458_v31 = vld [vmem:[%s2244_s12 + $0xc] sm:$0x1]  ;;  %v478_v33 = vshll.u32 %v455_v26, 16  ;;  %v484_v34 = vshll.u32 %v456_v27, 16  ;;  %v489_v35 = vshrl.u32 %v457_v30, 16  ;;  %v492_v36 = vshll.u32 %v457_v30, 16 }
  0x16   : > { %1856 = vmatmul.msk.bf16.vlgmr.msra.gmra.mxu0 %vm345_vm1, %v1843_v25  ;;  %v498_v37 = vshll.u32 %v458_v31, 16  ;;  %1065 = vmatpush.bf16.msra.mxu2 %v1056_v24  ;;  %vm471_vm2 = vsmask.f32 3328  ;;  %vm472_vm3 = vsmask.f32 7440  ;;  %v477_v39 = vrot.slane %v475_v32, 4 }
  0x17   : > { %v480_v40 = vrot.slane %v478_v33, 5  ;;  %1148 = vmatpush.bf16.msra.mxu3 %v1139_v28  ;;  %982 = vmatpush.bf16.msra.mxu1 %v973_v29  ;;  %v491_v41 = vrot.slane %v489_v35, 4  ;;  %v494_v42 = vrot.slane %v492_v36, 5  ;;  %v486_v44 = vrot.slane %v484_v34, 5  ;;  %vm2275_vm4 = vmor %vm471_vm2, %vm472_vm3  ;;  %v459_v49 = vld [vmem:[%s2244_s12 + $0x10] sm:$0xf] }
  0x18   : > { %v1333_v45 = vsel %vm358_vm0, %v2038_v38, 0  ;;  %v500_v48 = vrot.slane %v498_v37, 5  ;;  %v461_v50 = vld [vmem:[%s2244_s12 + $0x18] sm:$0xf]  ;;  %v1862_v51 = vld [vmem:[%s2244_s12] sm:$0xf] }
  0x19   : > { %v481_v43 = vor.u32 %v480_v40, %v477_v39  ;;  %v495_v47 = vor.u32 %v494_v42, %v491_v41  ;;  %1342 = vmatpush.bf16.msra.mxu0 %v1333_v45  ;;  %v503_v53 = vshrl.u32 %v459_v49, 16  ;;  %v506_v54 = vshll.u32 %v459_v49, 16  ;;  %v2054_v55 = vld [vmem:[%s2244_s12 + $0x4] sm:$0xf0]  ;;  %v1896_v60 = vld [vmem:[%s2244_s12 + $0x90] sm:$0xf] }
  0x1a   : > { %v517_v57 = vshrl.u32 %v461_v50, 16  ;;  %v520_v58 = vshll.u32 %v461_v50, 16  ;;  %v2062_v61 = vld [vmem:[%s2244_s12 + $0x94] sm:$0xf0]  ;;  %v2066_v3 = vld [vmem:[%s2244_s12 + $0xdc] sm:$0xf0]  ;;  %v1863_v9 = vor.u32 %v2054_v55, %v1862_v51 }
  0x1b   : > { %v482_v52 = vrot.slane %v481_v43, 4  ;;  %v496_v56 = vrot.slane %v495_v47, 4  ;;  %v505_v62 = vrot.slane %v503_v53, 4  ;;  %v508_v63 = vrot.slane %v506_v54, 5  ;;  %v1925_v2 = vld [vmem:[%s2244_s12 + $0xd8] sm:$0xf] }
  0x1c   : > { %v519_v4 = vrot.slane %v517_v57, 4  ;;  %v522_v5 = vrot.slane %v520_v58, 5  ;;  %v460_v7 = vld [vmem:[%s2244_s12 + $0x14] sm:$0x1]  ;;  %v462_v8 = vld [vmem:[%s2244_s12 + $0x1c] sm:$0x1]  ;;  %v1897_v11 = vor.u32 %v2062_v61, %v1896_v60  ;;  %v1926_v12 = vor.u32 %v2066_v3, %v1925_v2 }
  0x1d   : > { %v487_v59 = vsel %vm2275_vm4, %v482_v52, %v486_v44  ;;  %v501_v0 = vsel %vm2275_vm4, %v496_v56, %v500_v48  ;;  %v509_v13 = vor.u32 %v508_v63, %v505_v62  ;;  %v512_v14 = vshll.u32 %v460_v7, 16  ;;  %v463_v21 = vld [vmem:[%s2244_s12 + $0x20] sm:$0xf]  ;;  %v465_v22 = vld [vmem:[%s2244_s12 + $0x28] sm:$0xf] }
  0x1e   : > { %v588_v1 = vunpack.c.l.b16 %v487_v59  ;;  %v589_v6 = vunpack.c.l.b16 %v501_v0  ;;  %v523_v15 = vor.u32 %v522_v5, %v519_v4  ;;  %v526_v16 = vshll.u32 %v462_v8, 16  ;;  %v1866_v29 = vld [vmem:[%s2244_s12 + $0x10] sm:$0xf]  ;;  %v2055_v30 = vld [vmem:[%s2244_s12 + $0x14] sm:$0xf0] }
  0x1f   : > { %v510_v17 = vrot.slane %v509_v13, 4  ;;  %v514_v18 = vrot.slane %v512_v14, 5  ;;  %v531_v23 = vshrl.u32 %v463_v21, 16  ;;  %v534_v24 = vshll.u32 %v463_v21, 16  ;;  %v1900_v33 = vld [vmem:[%s2244_s12 + $0xa0] sm:$0xf] }
  0x20   : > { %v596_v10 = vpack.c.b16 %v589_v6, %v588_v1  ;;  %v524_v19 = vrot.slane %v523_v15, 4  ;;  %v528_v20 = vrot.slane %v526_v16, 5  ;;  %v545_v27 = vshrl.u32 %v465_v22, 16  ;;  %v2063_v34 = vld [vmem:[%s2244_s12 + $0xa4] sm:$0xf0] }
  0x21   : > { %v515_v25 = vsel %vm2275_vm4, %v510_v17, %v514_v18  ;;  %v548_v28 = vshll.u32 %v465_v22, 16  ;;  %v1929_v35 = vld [vmem:[%s2244_s12 + $0xe8] sm:$0xf]  ;;  %v2067_v36 = vld [vmem:[%s2244_s12 + $0xec] sm:$0xf0]  ;;  %v533_v37 = vrot.slane %v531_v23, 4  ;;  %v1867_v43 = vor.u32 %v2055_v30, %v1866_v29 }
  0x22   : > { %v529_v26 = vsel %vm2275_vm4, %v524_v19, %v528_v20  ;;  %v590_v31 = vunpack.c.l.b16 %v515_v25  ;;  %v536_v38 = vrot.slane %v534_v24, 5  ;;  %v547_v39 = vrot.slane %v545_v27, 4  ;;  %v464_v41 = vld [vmem:[%s2244_s12 + $0x24] sm:$0x1]  ;;  %v466_v42 = vld [vmem:[%s2244_s12 + $0x2c] sm:$0x1] }
  0x23   : > { %v591_v32 = vunpack.c.l.b16 %v529_v26  ;;  %v550_v40 = vrot.slane %v548_v28, 5  ;;  %v1901_v45 = vor.u32 %v2063_v34, %v1900_v33  ;;  %v1930_v47 = vor.u32 %v2067_v36, %v1929_v35  ;;  %v467_v52 = vld [vmem:[%s2244_s12 + $0x30] sm:$0xf]  ;;  %v469_v53 = vld [vmem:[%s2244_s12 + $0x38] sm:$0xf] }
  0x24   : > { %1876 = vmatmul.msk.bf16.vlgmr.msrb.gmra.mxu1 %vm345_vm1, %v1863_v9  ;;  %v537_v48 = vor.u32 %v536_v38, %v533_v37  ;;  %v540_v49 = vshll.u32 %v464_v41, 16  ;;  %v554_v51 = vshll.u32 %v466_v42, 16  ;;  %v559_v58 = vshrl.u32 %v467_v52, 16  ;;  %v468_v4 = vld [vmem:[%s2244_s12 + $0x34] sm:$0x1] }
  0x25   : > { %1881 = vmatmul.msk.bf16.vlgmr.msrb.gmra.mxu2 %vm345_vm1, %v596_v10  ;;  %1910 = vmatmul.msk.bf16.vlgmr.msrb.gmra.mxu3 %vm345_vm1, %v1897_v11  ;;  %v597_v44 = vpack.c.b16 %v591_v32, %v590_v31  ;;  %v551_v50 = vor.u32 %v550_v40, %v547_v39  ;;  %v562_v59 = vshll.u32 %v467_v52, 16  ;;  %v573_v60 = vshrl.u32 %v469_v53, 16  ;;  %v470_v5 = vld [vmem:[%s2244_s12 + $0x3c] sm:$0x1]  ;;  %v1870_v6 = vld [vmem:[%s2244_s12 + $0x20] sm:$0xf] }
  0x26   : > { %1939 = vmatmul.msk.bf16.vlgmr.msrb.gmra.mxu0 %vm345_vm1, %v1926_v12  ;;  %v538_v54 = vrot.slane %v537_v48, 4  ;;  %v542_v55 = vrot.slane %v540_v49, 5  ;;  %v556_v57 = vrot.slane %v554_v51, 5  ;;  %v576_v61 = vshll.u32 %v469_v53, 16  ;;  %v2056_v7 = vld [vmem:[%s2244_s12 + $0x24] sm:$0xf0] }
  0x27   : > { %v552_v56 = vrot.slane %v551_v50, 4  ;;  %v561_v0 = vrot.slane %v559_v58, 4  ;;  %v564_v1 = vrot.slane %v562_v59, 5  ;;  %v575_v2 = vrot.slane %v573_v60, 4  ;;  %v1904_v10 = vld [vmem:[%s2244_s12 + $0xb0] sm:$0xf] }
  0x28   : > { %v543_v62 = vsel %vm2275_vm4, %v538_v54, %v542_v55  ;;  %v578_v3 = vrot.slane %v576_v61, 5  ;;  %v2064_v11 = vld [vmem:[%s2244_s12 + $0xb4] sm:$0xf0]  ;;  %v2068_v13 = vld [vmem:[%s2244_s12 + $0xfc] sm:$0xf0]  ;;  %v568_v15 = vshll.u32 %v468_v4, 16  ;;  %v1871_v18 = vor.u32 %v2056_v7, %v1870_v6 }
  0x29   : > { %v557_v63 = vsel %vm2275_vm4, %v552_v56, %v556_v57  ;;  %v592_v8 = vunpack.c.l.b16 %v543_v62  ;;  %v1933_v12 = vld [vmem:[%s2244_s12 + $0xf8] sm:$0xf]  ;;  %v565_v14 = vor.u32 %v564_v1, %v561_v0  ;;  %v582_v17 = vshll.u32 %v470_v5, 16  ;;  %v1943_v26 = vld [vmem:[%s2244_s12 + $0x90] sm:$0xf] }
  0x2a   : > { %v593_v9 = vunpack.c.l.b16 %v557_v63  ;;  %v579_v16 = vor.u32 %v578_v3, %v575_v2  ;;  %v1905_v20 = vor.u32 %v2064_v11, %v1904_v10  ;;  %v1934_v21 = vor.u32 %v2068_v13, %v1933_v12  ;;  %v1945_v27 = vld [vmem:[%s2244_s12 + $0x98] sm:$0xf]  ;;  %v2022_v28 = vld [vmem:[%s2244_s12 + $0x8] sm:$0xf]  ;;  %v2024_v29 = vld [vmem:[%s2244_s12 + $0x10] sm:$0xf] }
  0x2b   : > { %v566_v22 = vrot.slane %v565_v14, 4  ;;  %v570_v23 = vrot.slane %v568_v15, 5  ;;  %v584_v25 = vrot.slane %v582_v17, 5  ;;  %v835_v32 = vshrl.u32 %v1943_v26, 16  ;;  %v1874_v40 = vld [vmem:[%s2244_s12 + $0x30] sm:$0xf] }
  0x2c   : > { %v598_v19 = vpack.c.b16 %v593_v9, %v592_v8  ;;  %v580_v24 = vrot.slane %v579_v16, 4  ;;  %v838_v33 = vshll.u32 %v1943_v26, 16  ;;  %v849_v34 = vshrl.u32 %v1945_v27, 16  ;;  %v2057_v41 = vld [vmem:[%s2244_s12 + $0x34] sm:$0xf0] }
  0x2d   : > { %v571_v30 = vsel %vm2275_vm4, %v566_v22, %v570_v23  ;;  %v852_v35 = vshll.u32 %v1945_v27, 16  ;;  %v1195_v36 = vshrl.u32 %v2022_v28, 16  ;;  %v1198_v37 = vshll.u32 %v2022_v28, 16  ;;  %v1946_v52 = vld [vmem:[%s2244_s12 + $0x9c] sm:$0x1] }
  0x2e   : > { %v585_v31 = vsel %vm2275_vm4, %v580_v24, %v584_v25  ;;  %v1209_v38 = vshrl.u32 %v2024_v29, 16  ;;  %v1212_v39 = vshll.u32 %v2024_v29, 16  ;;  %v594_v42 = vunpack.c.l.b16 %v571_v30  ;;  %v2023_v57 = vld [vmem:[%s2244_s12 + $0xc] sm:$0x1]  ;;  %v2025_v58 = vld [vmem:[%s2244_s12 + $0x14] sm:$0x1] }
  0x2f   : > { %v837_v48 = vrot.slane %v835_v32, 4  ;;  %v840_v49 = vrot.slane %v838_v33, 5  ;;  %v851_v50 = vrot.slane %v849_v34, 4  ;;  %v854_v51 = vrot.slane %v852_v35, 5  ;;  %v1937_v62 = vld [vmem:[%s2244_s12 + $0x108] sm:$0xf] }
  0x30   : > { %v1197_v53 = vrot.slane %v1195_v36, 4  ;;  %v1200_v54 = vrot.slane %v1198_v37, 5  ;;  %v1211_v55 = vrot.slane %v1209_v38, 4  ;;  %v1214_v56 = vrot.slane %v1212_v39, 5  ;;  %v2069_v63 = vld [vmem:[%s2244_s12 + $0x10c] sm:$0xf0] }
  0x31   : > { %v1875_v59 = vor.u32 %v2057_v41, %v1874_v40  ;;  %v841_v0 = vor.u32 %v840_v49, %v837_v48  ;;  %v855_v2 = vor.u32 %v854_v51, %v851_v50  ;;  %v858_v3 = vshll.u32 %v1946_v52, 16  ;;  %v1947_v9 = vld [vmem:[%s2244_s12 + $0xa0] sm:$0xf]  ;;  %v1949_v10 = vld [vmem:[%s2244_s12 + $0xa8] sm:$0xf] }
  0x32   : > { %v1201_v4 = vor.u32 %v1200_v54, %v1197_v53  ;;  %v1204_v5 = vshll.u32 %v2023_v57, 16  ;;  %v1215_v6 = vor.u32 %v1214_v56, %v1211_v55  ;;  %v1218_v7 = vshll.u32 %v2025_v58, 16  ;;  %v2026_v23 = vld [vmem:[%s2244_s12 + $0x18] sm:$0xf]  ;;  %v2028_v24 = vld [vmem:[%s2244_s12 + $0x20] sm:$0xf] }
  0x33   : > { %v1938_v8 = vor.u32 %v2069_v63, %v1937_v62  ;;  %v842_v11 = vrot.slane %v841_v0, 4  ;;  %v856_v13 = vrot.slane %v855_v2, 4  ;;  %v860_v14 = vrot.slane %v858_v3, 5  ;;  %v1948_v29 = vld [vmem:[%s2244_s12 + $0xa4] sm:$0x1] }
  0x34   : > { %1877 = vmatmul.msk.bf16.gmra.mxu1 %vm345_vm1, %v1867_v43  ;;  %v595_v43 = vunpack.c.l.b16 %v585_v31  ;;  %v1202_v15 = vrot.slane %v1201_v4, 4  ;;  %v1206_v16 = vrot.slane %v1204_v5, 5  ;;  %v1216_v17 = vrot.slane %v1215_v6, 4  ;;  %v1950_v34 = vld [vmem:[%s2244_s12 + $0xac] sm:$0x1] }
  0x35   : > { %1882 = vmatmul.msk.bf16.gmra.mxu2 %vm345_vm1, %v597_v44  ;;  %1911 = vmatmul.msk.bf16.gmra.mxu3 %vm345_vm1, %v1901_v45  ;;  %v1908_v44 = vld [vmem:[%s2244_s12 + $0xc0] sm:$0xf]  ;;  %v2065_v45 = vld [vmem:[%s2244_s12 + $0xc4] sm:$0xf0]  ;;  %v880_v22 = vshll.u32 %v1949_v10, 16  ;;  %v861_v26 = vsel %vm2275_vm4, %v856_v13, %v860_v14  ;;  %v1223_v35 = vshrl.u32 %v2026_v23, 16 }
  0x36   : > { %1940 = vmatmul.msk.bf16.gmra.mxu0 %vm345_vm1, %v1930_v47  ;;  %v1944_v47 = vld [vmem:[%s2244_s12 + $0x94] sm:$0x1]  ;;  %v599_v60 = vpack.c.b16 %v595_v43, %v594_v42  ;;  %v1909_v61 = vor.u32 %v2065_v45, %v1908_v44  ;;  %v1207_v27 = vsel %vm2275_vm4, %v1202_v15, %v1206_v16  ;;  %v1226_v36 = vshll.u32 %v2026_v23, 16  ;;  %v1975_v41 = vld [vmem:[%s2244_s12 + $0x8] sm:$0xf] }
  0x37   : > { %v844_v1 = vshll.u32 %v1944_v47, 16  ;;  %v882_v33 = vrot.slane %v880_v22, 5  ;;  %v1237_v37 = vshrl.u32 %v2028_v24, 16  ;;  %v1240_v38 = vshll.u32 %v2028_v24, 16  ;;  %v2070_v42 = vld [vmem:[%s2244_s12 + $0xc] sm:$0xf0] }
  0x38   : > { %v949_v40 = vunpack.c.l.b16 %v861_v26  ;;  %v1308_v43 = vunpack.c.l.b16 %v1207_v27  ;;  %v2004_v45 = vld [vmem:[%s2244_s12 + $0x50] sm:$0xf]  ;;  %v2074_v47 = vld [vmem:[%s2244_s12 + $0x54] sm:$0xf0]  ;;  %v872_v49 = vshll.u32 %v1948_v29, 16  ;;  %v886_v51 = vshll.u32 %v1950_v34, 16 }
  0x39   : > { %v846_v12 = vrot.slane %v844_v1, 5  ;;  %v1225_v52 = vrot.slane %v1223_v35, 4  ;;  %v1228_v53 = vrot.slane %v1226_v36, 5  ;;  %v1239_v54 = vrot.slane %v1237_v37, 4  ;;  %v2027_v57 = vld [vmem:[%s2244_s12 + $0x1c] sm:$0x1] }
  0x3a   : > { %v1242_v55 = vrot.slane %v1240_v38, 5  ;;  %v2029_v58 = vld [vmem:[%s2244_s12 + $0x24] sm:$0x1]  ;;  %v874_v63 = vrot.slane %v872_v49, 5  ;;  %v888_v1 = vrot.slane %v886_v51, 5  ;;  %v1232_v3 = vshll.u32 %v2027_v57, 16 }
  0x3b   : > { %v847_v25 = vsel %vm2275_vm4, %v842_v11, %v846_v12  ;;  %v1229_v2 = vor.u32 %v1228_v53, %v1225_v52  ;;  %v1246_v5 = vshll.u32 %v2029_v58, 16  ;;  %v1951_v6 = vld [vmem:[%s2244_s12 + $0xb0] sm:$0xf]  ;;  %v2071_v29 = vld [vmem:[%s2244_s12 + $0x1c] sm:$0xf0] }
  0x3c   : > { %v948_v39 = vunpack.c.l.b16 %v847_v25  ;;  %v1243_v4 = vor.u32 %v1242_v55, %v1239_v54  ;;  %v1234_v12 = vrot.slane %v1232_v3, 5  ;;  %v2032_v15 = vld [vmem:[%s2244_s12 + $0x30] sm:$0xf]  ;;  %v891_v16 = vshrl.u32 %v1951_v6, 16  ;;  %v1952_v35 = vld [vmem:[%s2244_s12 + $0xb4] sm:$0x1] }
  0x3d   : > { %v1230_v11 = vrot.slane %v1229_v2, 4  ;;  %v1248_v14 = vrot.slane %v1246_v5, 5  ;;  %v1265_v22 = vshrl.u32 %v2032_v15, 16  ;;  %v1268_v23 = vshll.u32 %v2032_v15, 16  ;;  %v1954_v36 = vld [vmem:[%s2244_s12 + $0xbc] sm:$0x1] }
  0x3e   : > { %v956_v56 = vpack.c.b16 %v949_v40, %v948_v39  ;;  %v1244_v13 = vrot.slane %v1243_v4, 4  ;;  %v2075_v39 = vld [vmem:[%s2244_s12 + $0x64] sm:$0xf0]  ;;  %v900_v49 = vshll.u32 %v1952_v35, 16  ;;  %v914_v51 = vshll.u32 %v1954_v36, 16 }
  0x3f   : > { %v1235_v26 = vsel %vm2275_vm4, %v1230_v11, %v1234_v12  ;;  %v1955_v3 = vld [vmem:[%s2244_s12 + $0xc0] sm:$0xf]  ;;  %v1957_v4 = vld [vmem:[%s2244_s12 + $0xc8] sm:$0xf] }
  0x40   : > { %v1249_v27 = vsel %vm2275_vm4, %v1244_v13, %v1248_v14  ;;  %v1310_v40 = vunpack.c.l.b16 %v1235_v26  ;;  %v933_v11 = vshrl.u32 %v1957_v4, 16  ;;  %v936_v12 = vshll.u32 %v1957_v4, 16  ;;  %v2016_v4 = vld [vmem:[%s2244_s12 + $0x80] sm:$0xf] }
  0x44   : > { %1878 = vmatmul.msk.bf16.gmra.mxu1 %vm345_vm1, %v1871_v18  ;;  %v1220_v18 = vrot.slane %v1218_v7, 5  ;;  %v1953_v7 = vld [vmem:[%s2244_s12 + $0xb8] sm:$0xf] }
  0x45   : > { %1883 = vmatmul.msk.bf16.gmra.mxu2 %vm345_vm1, %v598_v19  ;;  %1912 = vmatmul.msk.bf16.gmra.mxu3 %vm345_vm1, %v1905_v20  ;;  %v863_v19 = vshrl.u32 %v1947_v9, 16  ;;  %v866_v20 = vshll.u32 %v1947_v9, 16 }
  0x46   : > { %1941 = vmatmul.msk.bf16.gmra.mxu0 %vm345_vm1, %v1934_v21  ;;  %v877_v21 = vshrl.u32 %v1949_v10, 16  ;;  %v1221_v28 = vsel %vm2275_vm4, %v1216_v17, %v1220_v18  ;;  %v2030_v10 = vld [vmem:[%s2244_s12 + $0x28] sm:$0xf]  ;;  %v894_v17 = vshll.u32 %v1951_v6, 16  ;;  %v905_v18 = vshrl.u32 %v1953_v7, 16 }
  0x47   : > { %v865_v30 = vrot.slane %v863_v19, 4  ;;  %v868_v31 = vrot.slane %v866_v20, 5  ;;  %v1309_v44 = vunpack.c.l.b16 %v1221_v28  ;;  %v908_v19 = vshll.u32 %v1953_v7, 16  ;;  %v1979_v28 = vld [vmem:[%s2244_s12 + $0x18] sm:$0xf] }
  0x48   : > { %v879_v32 = vrot.slane %v877_v21, 4  ;;  %v1251_v20 = vshrl.u32 %v2030_v10, 16  ;;  %v1254_v21 = vshll.u32 %v2030_v10, 16  ;;  %v1980_v52 = vor.u32 %v2071_v29, %v1979_v28  ;;  %v2034_v7 = vld [vmem:[%s2244_s12 + $0x38] sm:$0xf] }
  0x49   : > { %v869_v48 = vor.u32 %v868_v31, %v865_v30  ;;  %v2008_v30 = vld [vmem:[%s2244_s12 + $0x60] sm:$0xf]  ;;  %v893_v31 = vrot.slane %v891_v16, 4  ;;  %v910_v34 = vrot.slane %v908_v19, 5  ;;  %v922_v10 = vshll.u32 %v1955_v3, 16 }
  0x4a   : > { %v883_v50 = vor.u32 %v882_v33, %v879_v32  ;;  %v896_v32 = vrot.slane %v894_v17, 5  ;;  %v907_v33 = vrot.slane %v905_v18, 4  ;;  %v1253_v37 = vrot.slane %v1251_v20, 4 }
  0x4b   : > { %v870_v62 = vrot.slane %v869_v48, 4  ;;  %v1256_v38 = vrot.slane %v1254_v21, 5  ;;  %v2009_v53 = vor.u32 %v2075_v39, %v2008_v30  ;;  %v1279_v15 = vshrl.u32 %v2034_v7, 16  ;;  %v1983_v21 = vld [vmem:[%s2244_s12 + $0x28] sm:$0xf] }
  0x4c   : > { %v884_v0 = vrot.slane %v883_v50, 4  ;;  %v897_v48 = vor.u32 %v896_v32, %v893_v31  ;;  %v911_v50 = vor.u32 %v910_v34, %v907_v33  ;;  %v1282_v16 = vshll.u32 %v2034_v7, 16  ;;  %v1956_v31 = vld [vmem:[%s2244_s12 + $0xc4] sm:$0x1]  ;;  %v1958_v32 = vld [vmem:[%s2244_s12 + $0xcc] sm:$0x1] }
  0x4d   : > { %v1257_v54 = vor.u32 %v1256_v38, %v1253_v37  ;;  %v924_v26 = vrot.slane %v922_v10, 5  ;;  %v938_v28 = vrot.slane %v936_v12, 5  ;;  %v1281_v33 = vrot.slane %v1279_v15, 4 }
  0x4e   : > { %v889_v9 = vsel %vm2275_vm4, %v884_v0, %v888_v1  ;;  %v1284_v34 = vrot.slane %v1282_v16, 5 }
  0x4f   : > { %v951_v25 = vunpack.c.l.b16 %v889_v9  ;;  %v919_v9 = vshrl.u32 %v1955_v3, 16  ;;  %v2073_v3 = vld [vmem:[%s2244_s12 + $0x3c] sm:$0xf0] }
  0x54   : > { %1879 = vmatmul.msk.bf16.gmra.mxu1 %vm345_vm1, %v1875_v59  ;;  %v1976_v59 = vor.u32 %v2070_v42, %v1975_v41  ;;  %v1311_v41 = vunpack.c.l.b16 %v1249_v27  ;;  %v2031_v42 = vld [vmem:[%s2244_s12 + $0x2c] sm:$0x1]  ;;  %v935_v27 = vrot.slane %v933_v11, 4 }
  0x55   : > { %1884 = vmatmul.msk.bf16.gmra.mxu2 %vm345_vm1, %v599_v60  ;;  %1913 = vmatmul.msk.bf16.gmra.mxu3 %vm345_vm1, %v1909_v61  ;;  %v2005_v60 = vor.u32 %v2074_v47, %v2004_v45  ;;  %v1316_v61 = vpack.c.b16 %v1309_v44, %v1308_v43  ;;  %v1267_v43 = vrot.slane %v1265_v22, 4  ;;  %v1270_v44 = vrot.slane %v1268_v23, 5  ;;  %v2033_v47 = vld [vmem:[%s2244_s12 + $0x34] sm:$0x1]  ;;  %v2072_v22 = vld [vmem:[%s2244_s12 + $0x2c] sm:$0xf0] }
  0x56   : > { %1942 = vmatmul.msk.bf16.gmra.mxu0 %vm345_vm1, %v1938_v8  ;;  %v875_v8 = vsel %vm2275_vm4, %v870_v62, %v874_v63  ;;  %v1260_v55 = vshll.u32 %v2031_v42, 16  ;;  %v1274_v58 = vshll.u32 %v2033_v47, 16  ;;  %v916_v62 = vrot.slane %v914_v51, 5  ;;  %v2012_v23 = vld [vmem:[%s2244_s12 + $0x70] sm:$0xf] }
  0x57   : > { %v950_v24 = vunpack.c.l.b16 %v875_v8  ;;  %v1271_v57 = vor.u32 %v1270_v44, %v1267_v43  ;;  %v1258_v63 = vrot.slane %v1257_v54, 4  ;;  %v2036_v8 = vld [vmem:[%s2244_s12 + $0x40] sm:$0xf]  ;;  %v1984_v38 = vor.u32 %v2072_v22, %v1983_v21 }
  0x58   : > { %v1262_v0 = vrot.slane %v1260_v55, 5  ;;  %v1276_v2 = vrot.slane %v1274_v58, 5  ;;  %v1293_v17 = vshrl.u32 %v2036_v8, 16  ;;  %v1296_v18 = vshll.u32 %v2036_v8, 16 }
  0x59   : > { %v957_v45 = vpack.c.b16 %v951_v25, %v950_v24  ;;  %v1272_v1 = vrot.slane %v1271_v57, 4  ;;  %v2076_v24 = vld [vmem:[%s2244_s12 + $0x74] sm:$0xf0]  ;;  %v921_v25 = vrot.slane %v919_v9, 4  ;;  %v928_v43 = vshll.u32 %v1956_v31, 16 }
  0x5a   : > { %v1263_v13 = vsel %vm2275_vm4, %v1258_v63, %v1262_v0  ;;  %v1295_v35 = vrot.slane %v1293_v17, 4  ;;  %v1298_v36 = vrot.slane %v1296_v18, 5  ;;  %v2013_v39 = vor.u32 %v2076_v24, %v2012_v23 }
  0x5b   : > { %v1277_v14 = vsel %vm2275_vm4, %v1272_v1, %v1276_v2  ;;  %v1312_v29 = vunpack.c.l.b16 %v1263_v13  ;;  %v925_v42 = vor.u32 %v924_v26, %v921_v25  ;;  %v939_v44 = vor.u32 %v938_v28, %v935_v27  ;;  %v1987_v2 = vld [vmem:[%s2244_s12 + $0x38] sm:$0xf] }
  0x5c   : > { %v1313_v30 = vunpack.c.l.b16 %v1277_v14  ;;  %v1988_v10 = vor.u32 %v2073_v3, %v1987_v2 }
  0x5d   : > { %v940_v54 = vrot.slane %v939_v44, 4 }
  0x5e   : > { %v1318_v47 = vpack.c.b16 %v1313_v30, %v1312_v29 }
  0x64   : > { %1960 = vmatmul.msk.bf16.vlgmr.msra.gmra.mxu1 %vm345_vm1, %v956_v56  ;;  %v1317_v56 = vpack.c.b16 %v1311_v41, %v1310_v40  ;;  %v2035_v40 = vld [vmem:[%s2244_s12 + $0x3c] sm:$0x1]  ;;  %v2037_v41 = vld [vmem:[%s2244_s12 + $0x44] sm:$0x1] }
  0x65   : > { %1989 = vmatmul.msk.bf16.vlgmr.msra.gmra.mxu2 %vm345_vm1, %v1976_v59  ;;  %2018 = vmatmul.msk.bf16.vlgmr.msra.gmra.mxu3 %vm345_vm1, %v2005_v60  ;;  %v898_v59 = vrot.slane %v897_v48, 4  ;;  %v902_v60 = vrot.slane %v900_v49, 5  ;;  %v1285_v48 = vor.u32 %v1284_v34, %v1281_v33  ;;  %v1288_v49 = vshll.u32 %v2035_v40, 16 }
  0x66   : > { %2039 = vmatmul.msk.bf16.vlgmr.msra.gmra.mxu0 %vm345_vm1, %v1316_v61  ;;  %v912_v61 = vrot.slane %v911_v50, 4  ;;  %v1299_v50 = vor.u32 %v1298_v36, %v1295_v35  ;;  %v1302_v51 = vshll.u32 %v2037_v41, 16 }
  0x67   : > { %v903_v5 = vsel %vm2275_vm4, %v898_v59, %v902_v60  ;;  %v1290_v57 = vrot.slane %v1288_v49, 5 }
  0x68   : > { %v917_v6 = vsel %vm2275_vm4, %v912_v61, %v916_v62  ;;  %v952_v19 = vunpack.c.l.b16 %v903_v5  ;;  %v1300_v58 = vrot.slane %v1299_v50, 4  ;;  %v1304_v59 = vrot.slane %v1302_v51, 5  ;;  %v2077_v5 = vld [vmem:[%s2244_s12 + $0x84] sm:$0xf0] }
  0x69   : > { %v953_v20 = vunpack.c.l.b16 %v917_v6  ;;  %v2017_v11 = vor.u32 %v2077_v5, %v2016_v4 }
  0x6a   : > { %v1305_v63 = vsel %vm2275_vm4, %v1300_v58, %v1304_v59 }
  0x6b   : > { %v958_v37 = vpack.c.b16 %v953_v20, %v952_v19  ;;  %v1315_v7 = vunpack.c.l.b16 %v1305_v63 }
  0x74   : > { %1961 = vmatmul.msk.bf16.gmra.mxu1 %vm345_vm1, %v957_v45  ;;  %v942_v45 = vshll.u32 %v1958_v32, 16 }
  0x75   : > { %1990 = vmatmul.msk.bf16.gmra.mxu2 %vm345_vm1, %v1980_v52  ;;  %2019 = vmatmul.msk.bf16.gmra.mxu3 %vm345_vm1, %v2009_v53  ;;  %v926_v52 = vrot.slane %v925_v42, 4  ;;  %v930_v53 = vrot.slane %v928_v43, 5 }
  0x76   : > { %2040 = vmatmul.msk.bf16.gmra.mxu0 %vm345_vm1, %v1317_v56  ;;  %v944_v55 = vrot.slane %v942_v45, 5  ;;  %v1286_v56 = vrot.slane %v1285_v48, 4 }
  0x77   : > { %v931_v60 = vsel %vm2275_vm4, %v926_v52, %v930_v53 }
  0x78   : > { %v945_v61 = vsel %vm2275_vm4, %v940_v54, %v944_v55  ;;  %v1291_v62 = vsel %vm2275_vm4, %v1286_v56, %v1290_v57  ;;  %v954_v0 = vunpack.c.l.b16 %v931_v60 }
  0x79   : > { %v955_v1 = vunpack.c.l.b16 %v945_v61  ;;  %v1314_v6 = vunpack.c.l.b16 %v1291_v62 }
  0x7b   : > { %v959_v8 = vpack.c.b16 %v955_v1, %v954_v0  ;;  %v1319_v12 = vpack.c.b16 %v1315_v7, %v1314_v6 }
  0x84   : > { %1962 = vmatmul.msk.bf16.gmra.mxu1 %vm345_vm1, %v958_v37 }
  0x85   : > { %1991 = vmatmul.msk.bf16.gmra.mxu2 %vm345_vm1, %v1984_v38  ;;  %2020 = vmatmul.msk.bf16.gmra.mxu3 %vm345_vm1, %v2013_v39 }
  0x86   : > { %2041 = vmatmul.msk.bf16.gmra.mxu0 %vm345_vm1, %v1318_v47 }
  0x91   : > { %v376_v9 = vpop.f32.mrf.mxu1 }
  0x93   : > { %v371_v13 = vpop.f32.mrf.mxu0 }
  0x94   : > { %1963 = vmatmul.msk.bf16.gmra.mxu1 %vm345_vm1, %v959_v8 }
  0x95   : > { %1992 = vmatmul.msk.bf16.gmra.mxu2 %vm345_vm1, %v1988_v10  ;;  %2021 = vmatmul.msk.bf16.gmra.mxu3 %vm345_vm1, %v2017_v11 }
  0x96   : > { %2042 = vmatmul.msk.bf16.gmra.mxu0 %vm345_vm1, %v1319_v12 }
  0x98   : > { %v381_v46 = vpop.f32.mrf.mxu2  ;;  %v2443_v14 = vpop.f32.mrf.mxu3 }
  0x99   : > { %v378_v15 = vpop.f32.mrf.mxu1 }
  0x9b   : > { %v373_v16 = vpop.f32.mrf.mxu0 }
  0xa0   : > { %v383_v17 = vpop.f32.mrf.mxu2  ;;  %v2445_v18 = vpop.f32.mrf.mxu3 }
  0xa1   : > { %v435_v19 = vpop.f32.mrf.mxu1 }
  0xa2   : > { %v436_v20 = vadd.f32 %v435_v19, %v371_v13 }
  0xa3   : > { %v790_v21 = vpop.f32.mrf.mxu0 }
  0xa8   : > { %v624_v22 = vpop.f32.mrf.mxu2  ;;  %v707_v23 = vpop.f32.mrf.mxu3 }
  0xa9   : > { %v644_v24 = vadd.f32 %v624_v22, %v436_v20  ;;  %v437_v25 = vpop.f32.mrf.mxu1 }
  0xaa   : > { %v438_v26 = vadd.f32 %v437_v25, %v373_v16 }
  0xab   : > { %v727_v27 = vadd.f32 %v707_v23, %v644_v24  ;;  %v792_v28 = vpop.f32.mrf.mxu0  ;;  %v2470_v23 = vld [vmem:[%s2731_s2] ss:$0 sm:$0xff] }
  0xad   : > { %v810_v29 = vadd.f32 %v790_v21, %v727_v27 }
  0xb0   : > { %v626_v30 = vpop.f32.mrf.mxu2  ;;  %v709_v31 = vpop.f32.mrf.mxu3 }
  0xb1   : > { %v645_v32 = vadd.f32 %v626_v30, %v438_v26  ;;  %v440_v33 = vpop.f32.mrf.mxu1 }
  0xb2   : > { %v441_v34 = vadd.f32 %v440_v33, %v376_v9 }
  0xb3   : > { %v728_v35 = vadd.f32 %v709_v31, %v645_v32  ;;  %v795_v36 = vpop.f32.mrf.mxu0 }
  0xb5   : > { %v811_v37 = vadd.f32 %v792_v28, %v728_v35 }
  0xb8   : > { %v629_v38 = vpop.f32.mrf.mxu2  ;;  %v712_v39 = vpop.f32.mrf.mxu3 }
  0xb9   : > { %v646_v40 = vadd.f32 %v629_v38, %v441_v34  ;;  %v442_v41 = vpop.f32.mrf.mxu1 }
  0xba   : > { %v443_v42 = vadd.f32 %v442_v41, %v378_v15 }
  0xbb   : > { %v729_v43 = vadd.f32 %v712_v39, %v646_v40  ;;  %v797_v44 = vpop.f32.mrf.mxu0 }
  0xbd   : > { %v812_v45 = vadd.f32 %v795_v36, %v729_v43 }
  0xc0   : > { %v631_v47 = vpop.f32.mrf.mxu2  ;;  %v714_v48 = vpop.f32.mrf.mxu3 }
  0xc1   : > { %v647_v49 = vadd.f32 %v631_v47, %v443_v42  ;;  %v445_v50 = vpop.f32.mrf.mxu1 }
  0xc2   : > { %v446_v51 = vadd.f32 %v445_v50, %v381_v46 }
  0xc3   : > { %v730_v52 = vadd.f32 %v714_v48, %v647_v49  ;;  %v800_v53 = vpop.f32.mrf.mxu0 }
  0xc5   : > { %v813_v54 = vadd.f32 %v797_v44, %v730_v52 }
  0xc8   : > { %v634_v55 = vpop.f32.mrf.mxu2  ;;  %v717_v56 = vpop.f32.mrf.mxu3 }
  0xc9   : > { %v648_v57 = vadd.f32 %v634_v55, %v446_v51  ;;  %v447_v58 = vpop.f32.mrf.mxu1 }
  0xca   : > { %v448_v59 = vadd.f32 %v447_v58, %v383_v17 }
  0xcb   : > { %v731_v60 = vadd.f32 %v717_v56, %v648_v57  ;;  %v802_v61 = vpop.f32.mrf.mxu0 }
  0xcd   : > { %v2447_v62 = vadd.f32 %v800_v53, %v731_v60 }
  0xd0   : > { %v636_v63 = vpop.f32.mrf.mxu2  ;;  %v719_v0 = vpop.f32.mrf.mxu3 }
  0xd1   : > { %v649_v1 = vadd.f32 %v636_v63, %v448_v59  ;;  %v2449_v2 = vpop.f32.mrf.mxu1 }
  0xd3   : > { %v732_v3 = vadd.f32 %v719_v0, %v649_v1  ;;  %v2451_v4 = vpop.f32.mrf.mxu0 }
  0xd5   : > { %v2453_v5 = vadd.f32 %v802_v61, %v732_v3 }
  0xd8   : > { %v2455_v6 = vpop.f32.mrf.mxu2  ;;  %v2457_v7 = vpop.f32.mrf.mxu3 }
  0xd9   : > { %v2459_v8 = vpop.f32.mrf.mxu1 }
  0xdb   : > { %v2461_v9 = vpop.f32.mrf.mxu0 }
  0xe0   : > { %v2463_v10 = vpop.f32.mrf.mxu2  ;;  %v2465_v11 = vpop.f32.mrf.mxu3 }
  0xe1   : > { %v984_v12 = vpop.f32.mrf.mxu1 }
  0xe2   : > { %v1004_v46 = vadd.f32 %v984_v12, %v810_v29 }
  0xe3   : > { %v1344_v13 = vpop.f32.mrf.mxu0 }
  0xe8   : > { %v1067_v15 = vpop.f32.mrf.mxu2  ;;  %v1150_v16 = vpop.f32.mrf.mxu3 }
  0xe9   : > { %v1087_v17 = vadd.f32 %v1067_v15, %v1004_v46  ;;  %v986_v19 = vpop.f32.mrf.mxu1 }
  0xea   : > { %v1005_v24 = vadd.f32 %v986_v19, %v811_v37  ;;  %v451_v19 = vadd.f32 %v2449_v2, %v2443_v14 }
  0xeb   : > { %v1170_v20 = vadd.f32 %v1150_v16, %v1087_v17  ;;  %v1346_v21 = vpop.f32.mrf.mxu0 }
  0xed   : > { %v1364_v22 = vadd.f32 %v1344_v13, %v1170_v20 }
  0xef   : > { %v1376_v27 = vadd.f32 %v2470_v23, %v1364_v22 }
  0xf0   : > { %v1069_v25 = vpop.f32.mrf.mxu2  ;;  %v1152_v26 = vpop.f32.mrf.mxu3 }
  0xf1   : > { %v1088_v28 = vadd.f32 %v1069_v25, %v1005_v24  ;;  %v989_v30 = vpop.f32.mrf.mxu1  ;;  %v1392_v32 = vmul.f32 0.01, %v1376_v27  ;;  %vm1384_vm5 = vcmp.gt.f32.partialorder %v1376_v27, 0.0  ;;  %v650_v25 = vadd.f32 %v2455_v6, %v451_v19 }
  0xf2   : > { %v1006_v35 = vadd.f32 %v989_v30, %v812_v45 }
  0xf3   : > { %v1171_v29 = vadd.f32 %v1152_v26, %v1088_v28  ;;  %v1349_v31 = vpop.f32.mrf.mxu0  ;;  %v2474_v39 = vsel %vm1384_vm5, %v1376_v27, %v1392_v32  ;;  %v733_v14 = vadd.f32 %v2457_v7, %v650_v25 }
  0xf4   : > { %v1421_v47 = vmul.f32 %v2474_v39, %v2474_v39 }
  0xf5   : > { %v1365_v33 = vadd.f32 %v1346_v21, %v1171_v29  ;;  %v816_v7 = vadd.f32 %v2451_v4, %v733_v14 }
  0xf7   : > { %v1377_v34 = vadd.f32 %v2470_v23, %v1365_v33 }
  0xf8   : > { %v1072_v36 = vpop.f32.mrf.mxu2  ;;  %v1155_v38 = vpop.f32.mrf.mxu3 }
  0xf9   : > { %vm1385_vm6 = vcmp.gt.f32.partialorder %v1377_v34, 0.0  ;;  %v1393_v37 = vmul.f32 0.01, %v1377_v34  ;;  %v1089_v40 = vadd.f32 %v1072_v36, %v1006_v35  ;;  %v991_v41 = vpop.f32.mrf.mxu1 }
  0xfa   : > { %v1007_v52 = vadd.f32 %v991_v41, %v813_v54 }
  0xfb   : > { %v2476_v42 = vsel %vm1385_vm6, %v1377_v34, %v1393_v37  ;;  %v1172_v43 = vadd.f32 %v1155_v38, %v1089_v40  ;;  %v1351_v44 = vpop.f32.mrf.mxu0  ;;  %v453_v34 = vadd.f32 %v2459_v8, %v2445_v18 }
  0xfc   : > { %v1408_v48 = vadd.f32 %v2476_v42, %v2474_v39  ;;  %v1422_v45 = vmul.f32 %v2476_v42, %v2476_v42 }
  0xfd   : > { %v1366_v49 = vadd.f32 %v1349_v31, %v1172_v43  ;;  %v651_v38 = vadd.f32 %v2463_v10, %v453_v34 }
  0xfe   : > { %v1429_v50 = vadd.f32 %v1422_v45, %v1421_v47 }
  0xff   : > { %v1378_v51 = vadd.f32 %v2470_v23, %v1366_v49  ;;  %v734_v18 = vadd.f32 %v2465_v11, %v651_v38 }
 0x100   : > { %v1074_v53 = vpop.f32.mrf.mxu2  ;;  %v1157_v55 = vpop.f32.mrf.mxu3 }
 0x101   : > { %vm1386_vm7 = vcmp.gt.f32.partialorder %v1378_v51, 0.0  ;;  %v1394_v56 = vmul.f32 0.01, %v1378_v51  ;;  %v1090_v57 = vadd.f32 %v1074_v53, %v1007_v52  ;;  %v994_v58 = vpop.f32.mrf.mxu1  ;;  %v817_v53 = vadd.f32 %v2461_v9, %v734_v18 }
 0x102   : > { %v1008_v54 = vadd.f32 %v994_v58, %v2447_v62 }
 0x103   : > { %v2485_v59 = vsel %vm1386_vm7, %v1378_v51, %v1394_v56  ;;  %v1173_v60 = vadd.f32 %v1157_v55, %v1090_v57  ;;  %v1354_v1 = vpop.f32.mrf.mxu0 }
 0x104   : > { %v1409_v61 = vadd.f32 %v1408_v48, %v2485_v59  ;;  %v1423_v63 = vmul.f32 %v2485_v59, %v2485_v59 }
 0x105   : > { %v1367_v0 = vadd.f32 %v1351_v44, %v1173_v60 }
 0x106   : > { %v1430_v3 = vadd.f32 %v1429_v50, %v1423_v63 }
 0x107   : > { %v1379_v12 = vadd.f32 %v2470_v23, %v1367_v0 }
 0x108   : > { %v1077_v13 = vpop.f32.mrf.mxu2  ;;  %v1160_v46 = vpop.f32.mrf.mxu3 }
 0x109   : > { %vm1387_vm8 = vcmp.gt.f32.partialorder %v1379_v12, 0.0  ;;  %v1395_v15 = vmul.f32 0.01, %v1379_v12  ;;  %v1091_v16 = vadd.f32 %v1077_v13, %v1008_v54  ;;  %v996_v17 = vpop.f32.mrf.mxu1 }
 0x10a   : > { %v1009_v28 = vadd.f32 %v996_v17, %v2453_v5 }
 0x10b   : > { %v2494_v20 = vsel %vm1387_vm8, %v1379_v12, %v1395_v15  ;;  %v1174_v21 = vadd.f32 %v1160_v46, %v1091_v16  ;;  %v1356_v30 = vpop.f32.mrf.mxu0 }
 0x10c   : > { %v1410_v22 = vadd.f32 %v1409_v61, %v2494_v20  ;;  %v1424_v24 = vmul.f32 %v2494_v20, %v2494_v20 }
 0x10d   : > { %v1368_v62 = vadd.f32 %v1354_v1, %v1174_v21 }
 0x10e   : > { %v1431_v26 = vadd.f32 %v1430_v3, %v1424_v24 }
 0x10f   : > { %v1380_v27 = vadd.f32 %v2470_v23, %v1368_v62 }
 0x110   : > { %v1079_v29 = vpop.f32.mrf.mxu2  ;;  %v1162_v31 = vpop.f32.mrf.mxu3 }
 0x111   : > { %vm1388_vm9 = vcmp.gt.f32.partialorder %v1380_v27, 0.0  ;;  %v1396_v2 = vmul.f32 0.01, %v1380_v27  ;;  %v1092_v32 = vadd.f32 %v1079_v29, %v1009_v28  ;;  %v999_v33 = vpop.f32.mrf.mxu1 }
 0x112   : > { %v1010_v43 = vadd.f32 %v999_v33, %v816_v7 }
 0x113   : > { %v2505_v35 = vsel %vm1388_vm9, %v1380_v27, %v1396_v2  ;;  %v1175_v6 = vadd.f32 %v1162_v31, %v1092_v32  ;;  %v1359_v45 = vpop.f32.mrf.mxu0 }
 0x114   : > { %v1411_v36 = vadd.f32 %v1410_v22, %v2505_v35  ;;  %v1425_v5 = vmul.f32 %v2505_v35, %v2505_v35 }
 0x115   : > { %v1369_v37 = vadd.f32 %v1356_v30, %v1175_v6 }
 0x116   : > { %v1432_v40 = vadd.f32 %v1431_v26, %v1425_v5 }
 0x117   : > { %v1381_v41 = vadd.f32 %v2470_v23, %v1369_v37 }
 0x118   : > { %v1082_v44 = vpop.f32.mrf.mxu2  ;;  %v1165_v47 = vpop.f32.mrf.mxu3 }
 0x119   : > { %vm1389_vm10 = vcmp.gt.f32.partialorder %v1381_v41, 0.0  ;;  %v1397_v8 = vmul.f32 0.01, %v1381_v41  ;;  %v1093_v48 = vadd.f32 %v1082_v44, %v1010_v43  ;;  %v1001_v51 = vpop.f32.mrf.mxu1 }
 0x11a   : > { %v1011_v11 = vadd.f32 %v1001_v51, %v817_v53 }
 0x11b   : > { %v2514_v49 = vsel %vm1389_vm10, %v1381_v41, %v1397_v8  ;;  %v1176_v50 = vadd.f32 %v1165_v47, %v1093_v48  ;;  %v1361_v12 = vpop.f32.mrf.mxu0 }
 0x11c   : > { %v1412_v10 = vadd.f32 %v1411_v36, %v2514_v49  ;;  %v1426_v4 = vmul.f32 %v2514_v49, %v2514_v49 }
 0x11d   : > { %v1370_v52 = vadd.f32 %v1359_v45, %v1176_v50  ;;  %v2108_v50 = vld [vmem:[%s2733_s4] ss:$0 sm:$0xff] }
 0x11e   : > { %v1433_v55 = vadd.f32 %v1432_v40, %v1426_v4 }
 0x11f   : > { %v1382_v56 = vadd.f32 %v2470_v23, %v1370_v52 }
 0x120   : > { %v1084_v57 = vpop.f32.mrf.mxu2  ;;  %v1167_v61 = vpop.f32.mrf.mxu3 }
 0x121   : > { %vm1390_vm11 = vcmp.gt.f32.partialorder %v1382_v56, 0.0  ;;  %v1398_v58 = vmul.f32 0.01, %v1382_v56  ;;  %v1094_v60 = vadd.f32 %v1084_v57, %v1011_v11 }
 0x123   : > { %v1406_v63 = vsel %vm1390_vm11, %v1382_v56, %v1398_v58  ;;  %v1177_v0 = vadd.f32 %v1167_v61, %v1094_v60 }
 0x124   : > { %v1413_v1 = vadd.f32 %v1412_v10, %v1406_v63  ;;  %v1427_v3 = vmul.f32 %v1406_v63, %v1406_v63 }
 0x125   : > { %v1371_v54 = vadd.f32 %v1361_v12, %v1177_v0 }
 0x126   : > { %v1434_v13 = vadd.f32 %v1433_v55, %v1427_v3 }
 0x127   : > { %v1383_v46 = vadd.f32 %v2470_v23, %v1371_v54 }
 0x129   : > { %vm1391_vm12 = vcmp.gt.f32.partialorder %v1383_v46, 0.0  ;;  %v1399_v9 = vmul.f32 0.01, %v1383_v46 }
 0x12b   : > { %v1407_v15 = vsel %vm1391_vm12, %v1383_v46, %v1399_v9 }
 0x12c   : > { %v1414_v16 = vadd.f32 %v1413_v1, %v1407_v15  ;;  %v1428_v17 = vmul.f32 %v1407_v15, %v1407_v15 }
 0x12e   : > { %v1415_v19 = vrot.slane %v1414_v16, 4  ;;  %v1435_v21 = vadd.f32 %v1434_v13, %v1428_v17 }
 0x130   : > { %v1416_v22 = vadd.f32 %v1415_v19, %v1414_v16  ;;  %v1436_v24 = vrot.slane %v1435_v21, 4 }
 0x132   : > { %v1417_v25 = vrot.slane %v1416_v22, 2  ;;  %v1437_v62 = vadd.f32 %v1436_v24, %v1435_v21 }
 0x134   : > { %v1418_v26 = vadd.f32 %v1417_v25, %v1416_v22  ;;  %v1438_v27 = vrot.slane %v1437_v62, 2 }
 0x136   : > { %v1419_v28 = vrot.slane %v1418_v26, 1  ;;  %v1439_v30 = vadd.f32 %v1438_v27, %v1437_v62 }
 0x138   : > { %v1420_v29 = vadd.f32 %v1419_v28, %v1418_v26  ;;  %v1440_v31 = vrot.slane %v1439_v30, 1 }
 0x13a   : > { %v1441_v14 = vadd.f32 %v1440_v31, %v1439_v30  ;;  %v1442_v2 = vmul.f32 0.015625, %v1420_v29 }
 0x13c   : > { %v1443_v23 = vmul.f32 0.015625, %v1441_v14  ;;  %v1444_v32 = vmul.f32 %v1442_v2, %v1442_v2  ;;  %v1447_v33 = vsub.f32 %v2474_v39, %v1442_v2  ;;  %v1448_v34 = vsub.f32 %v2476_v42, %v1442_v2 }
 0x13d   : > { %v1449_v6 = vsub.f32 %v2485_v59, %v1442_v2  ;;  %v1450_v36 = vsub.f32 %v2494_v20, %v1442_v2  ;;  %v1451_v5 = vsub.f32 %v2505_v35, %v1442_v2  ;;  %v1452_v38 = vsub.f32 %v2514_v49, %v1442_v2  ;;  %v2107_v59 = vld [vmem:[%s2732_s3] ss:$0 sm:$0xff] }
 0x13e   : > { %v1445_v37 = vsub.f32 %v1443_v23, %v1444_v32  ;;  %v1453_v7 = vsub.f32 %v1406_v63, %v1442_v2  ;;  %v1454_v40 = vsub.f32 %v1407_v15, %v1442_v2 }
 0x140   : > { %v1446_v41 = vmax.f32 %v1445_v37, 0.0 }
 0x142   : > { %v1455_v43 = vadd.f32 1e-06, %v1446_v41 }
 0x144   : > { %2109 = vrsqrt.f32 %v1455_v43  ;;  %vm1462_vm14 = vweird.f32 %v1455_v43 }
 0x14a   : > { %v2110_v44 = vpop.eup %2109 }
 0x14b   : > { %v1457_v47 = vmul.f32 %v2110_v44, %v1455_v43  ;;  %vm1463_vm13 = vweird.f32 %v2110_v44 }
 0x14c   : > { %vm1464_vm15 = vmor %vm1462_vm14, %vm1463_vm13 }
 0x14d   : > { %v1458_v18 = vmul.f32 %v2110_v44, %v1457_v47 }
 0x14f   : > { %v1459_v39 = vmul.f32 0.5, %v1458_v18 }
 0x151   : > { %v1460_v8 = vsub.f32 1.5, %v1459_v39 }
 0x153   : > { %v1461_v42 = vmul.f32 %v2110_v44, %v1460_v8 }
 0x155   : > { %v1465_v20 = vsel %vm1464_vm15, %v2110_v44, %v1461_v42 }
 0x156   : > { %v1466_v35 = vmul.f32 %v1465_v20, %v1447_v33  ;;  %v1467_v48 = vmul.f32 %v1465_v20, %v1448_v34  ;;  %v1468_v45 = vmul.f32 %v1465_v20, %v1449_v6  ;;  %v1469_v49 = vmul.f32 %v1465_v20, %v1450_v36 }
 0x157   : > { %v1470_v10 = vmul.f32 %v1465_v20, %v1451_v5  ;;  %v1471_v4 = vmul.f32 %v1465_v20, %v1452_v38  ;;  %v1472_v51 = vmul.f32 %v1465_v20, %v1453_v7  ;;  %v1473_v52 = vmul.f32 %v1465_v20, %v1454_v40 }
 0x158   : > { %v1478_v53 = vmul.f32 %v2107_v59, %v1466_v35  ;;  %v1479_v55 = vmul.f32 %v2107_v59, %v1467_v48  ;;  %v1480_v56 = vmul.f32 %v2107_v59, %v1468_v45  ;;  %v1481_v11 = vmul.f32 %v2107_v59, %v1469_v49 }
 0x159   : > { %v1482_v57 = vmul.f32 %v2107_v59, %v1470_v10  ;;  %v1483_v58 = vmul.f32 %v2107_v59, %v1471_v4  ;;  %v1484_v60 = vmul.f32 %v2107_v59, %v1472_v51  ;;  %v1485_v61 = vmul.f32 %v2107_v59, %v1473_v52 }
 0x15a   : > { %v1490_v63 = vadd.f32 %v2108_v50, %v1478_v53  ;;  %v1491_v0 = vadd.f32 %v2108_v50, %v1479_v55  ;;  %v1492_v1 = vadd.f32 %v2108_v50, %v1480_v56  ;;  %v1493_v3 = vadd.f32 %v2108_v50, %v1481_v11 }
 0x15b   : > { %v1494_v12 = vadd.f32 %v2108_v50, %v1482_v57  ;;  %v1495_v54 = vadd.f32 %v2108_v50, %v1483_v58  ;;  %v1496_v13 = vadd.f32 %v2108_v50, %v1484_v60  ;;  %v1497_v46 = vadd.f32 %v2108_v50, %v1485_v61 }
 0x15c   : > { %vm1498_vm0 = vcmp.gt.f32.partialorder %v1490_v63, 0.0  ;;  %vm1499_vm1 = vcmp.gt.f32.partialorder %v1491_v0, 0.0  ;;  %vm1500_vm2 = vcmp.gt.f32.partialorder %v1492_v1, 0.0  ;;  %vm1501_vm3 = vcmp.gt.f32.partialorder %v1493_v3, 0.0 }
 0x15d   : > { %vm1502_vm4 = vcmp.gt.f32.partialorder %v1494_v12, 0.0  ;;  %vm1503_vm5 = vcmp.gt.f32.partialorder %v1495_v54, 0.0  ;;  %v1506_v9 = vmul.f32 0.01, %v1490_v63  ;;  %v1507_v15 = vmul.f32 0.01, %v1491_v0 }
 0x15e   : > { %v1508_v16 = vmul.f32 0.01, %v1492_v1  ;;  %v1509_v17 = vmul.f32 0.01, %v1493_v3  ;;  %v1510_v19 = vmul.f32 0.01, %v1494_v12 }
 0x15f   : > { %v1511_v21 = vmul.f32 0.01, %v1495_v54  ;;  %vm1504_vm6 = vcmp.gt.f32.partialorder %v1496_v13, 0.0  ;;  %v1512_v22 = vmul.f32 0.01, %v1496_v13  ;;  %v2534_v24 = vsel %vm1498_vm0, %v1490_v63, %v1506_v9 }
 0x160   : > { %v2536_v25 = vsel %vm1499_vm1, %v1491_v0, %v1507_v15  ;;  %v1513_v62 = vmul.f32 0.01, %v1497_v46  ;;  %v2538_v26 = vsel %vm1500_vm2, %v1492_v1, %v1508_v16  ;;  %v2540_v27 = vsel %vm1501_vm3, %v1493_v3, %v1509_v17 }
 0x161   : > { %v2542_v28 = vsel %vm1502_vm4, %v1494_v12, %v1510_v19  ;;  %vm1505_vm7 = vcmp.gt.f32.partialorder %v1497_v46, 0.0  ;;  %v2545_v30 = vsel %vm1503_vm5, %v1495_v54, %v1511_v21  ;;  %v2043_v29 = vmul.f32 -1.442695, %v2534_v24 }
 0x162   : > { %v2044_v31 = vmul.f32 -1.442695, %v2536_v25  ;;  %v2045_v14 = vmul.f32 -1.442695, %v2538_v26  ;;  %v2046_v2 = vmul.f32 -1.442695, %v2540_v27  ;;  %v2551_v23 = vsel %vm1504_vm6, %v1496_v13, %v1512_v22 }
 0x163   : > { %2111 = vpow2.f32 %v2043_v29  ;;  %v2047_v32 = vmul.f32 -1.442695, %v2542_v28  ;;  %v2554_v33 = vsel %vm1505_vm7, %v1497_v46, %v1513_v62  ;;  %v2048_v34 = vmul.f32 -1.442695, %v2545_v30 }
 0x164   : > { %2113 = vpow2.f32 %v2044_v31  ;;  %v2049_v6 = vmul.f32 -1.442695, %v2551_v23  ;;  %v2050_v36 = vmul.f32 -1.442695, %v2554_v33 }
 0x165   : > { %2115 = vpow2.f32 %v2045_v14 }
 0x166   : > { %2117 = vpow2.f32 %v2046_v2 }
 0x167   : > { %2119 = vpow2.f32 %v2047_v32 }
 0x168   : > { %2121 = vpow2.f32 %v2048_v34 }
 0x169   : > { %v2112_v5 = vpop.eup %2111  ;;  %2123 = vpow2.f32 %v2049_v6 }
 0x16a   : > { %v2114_v38 = vpop.eup %2113  ;;  %v2559_v37 = vadd.f32 1.0, %v2112_v5  ;;  %2125 = vpow2.f32 %v2050_v36 }
 0x16b   : > { %v2116_v7 = vpop.eup %2115  ;;  %v2561_v40 = vadd.f32 1.0, %v2114_v38 }
 0x16c   : > { %v2118_v41 = vpop.eup %2117  ;;  %v2563_v43 = vadd.f32 1.0, %v2116_v7  ;;  %2127 = vrcp.f32 %v2559_v37  ;;  %v1565_v8 = vand.u32 2147483648, %v2559_v37  ;;  %vm1559_vm8 = vweird.f32 %v2559_v37 }
 0x16d   : > { %v2120_v44 = vpop.eup %2119  ;;  %v2566_v47 = vadd.f32 1.0, %v2118_v41  ;;  %2129 = vrcp.f32 %v2561_v40  ;;  %v1580_v59 = vand.u32 2147483648, %v2561_v40  ;;  %v1563_v45 = vand.u32 2147483647, %v2559_v37 }
 0x16e   : > { %v2122_v18 = vpop.eup %2121  ;;  %v2569_v39 = vadd.f32 1.0, %v2120_v44  ;;  %2131 = vrcp.f32 %v2563_v43  ;;  %v1566_v10 = vor.u32 1.1754944e-38, %v1565_v8  ;;  %vm1574_vm9 = vweird.f32 %v2561_v40 }
 0x16f   : > { %v2124_v42 = vpop.eup %2123  ;;  %v2574_v35 = vadd.f32 1.0, %v2122_v18  ;;  %2133 = vrcp.f32 %v2566_v47  ;;  %v1578_v4 = vand.u32 2147483647, %v2561_v40  ;;  %v1595_v51 = vand.u32 2147483648, %v2563_v43 }
 0x170   : > { %v2126_v20 = vpop.eup %2125  ;;  %2135 = vrcp.f32 %v2569_v39  ;;  %v2589_v52 = vadd.f32 1.0, %v2124_v42  ;;  %v1581_v55 = vor.u32 1.1754944e-38, %v1580_v59  ;;  %vm1589_vm10 = vweird.f32 %v2563_v43 }
 0x171   : > { %v1593_v56 = vand.u32 2147483647, %v2563_v43  ;;  %v2597_v57 = vadd.f32 1.0, %v2126_v20  ;;  %v1608_v60 = vand.u32 2147483647, %v2566_v47  ;;  %2137 = vrcp.f32 %v2574_v35 }
 0x172   : > { %v2577_v48 = vpop.eup %2127  ;;  %vm2602_vm12 = vcmp.eq.f32.partialorder %v1563_v45, 8.507059e+37  ;;  %vm1604_vm13 = vweird.f32 %v2566_v47  ;;  %v1610_v1 = vand.u32 2147483648, %v2566_v47  ;;  %vm2611_vm14 = vcmp.eq.f32.partialorder %v1578_v4, 8.507059e+37 }
 0x173   : > { %v2582_v49 = vpop.eup %2129  ;;  %v1555_v50 = vmul.f32 %v2577_v48, %v2559_v37  ;;  %vm1560_vm11 = vweird.f32 %v2577_v48  ;;  %v1596_v13 = vor.u32 1.1754944e-38, %v1595_v51  ;;  %vm1619_vm15 = vweird.f32 %v2569_v39 }
 0x174   : > { %v1570_v53 = vmul.f32 %v2582_v49, %v2561_v40  ;;  %v2595_v11 = vpop.eup %2131  ;;  %v1623_v46 = vand.u32 2147483647, %v2569_v39  ;;  %vm1575_vm0 = vweird.f32 %v2582_v49  ;;  %vm2619_vm1 = vcmp.eq.f32.partialorder %v1593_v56, 8.507059e+37  ;;  %vm2638_vm4 = vmor %vm1559_vm8, %vm1560_vm11 }
 0x175   : > { %v1556_v58 = vsub.f32 1.0, %v1555_v50  ;;  %v1585_v0 = vmul.f32 %v2595_v11, %v2563_v43  ;;  %v2134_v3 = vpop.eup %2133  ;;  %vm2625_vm2 = vcmp.eq.f32.partialorder %v1608_v60, 8.507059e+37  ;;  %v1625_v29 = vand.u32 2147483648, %v2569_v39  ;;  %vm2654_vm6 = vmor %vm1574_vm9, %vm1575_vm0 }
 0x176   : > { %v1571_v63 = vsub.f32 1.0, %v1570_v53  ;;  %v2136_v9 = vpop.eup %2135  ;;  %v1600_v19 = vmul.f32 %v2134_v3, %v2566_v47  ;;  %vm1590_vm3 = vweird.f32 %v2595_v11  ;;  %v1611_v6 = vor.u32 1.1754944e-38, %v1610_v1 }
 0x177   : > { %v1557_v12 = vmul.f32 %v2577_v48, %v1556_v58  ;;  %v1586_v16 = vsub.f32 1.0, %v1585_v0  ;;  %v1615_v62 = vmul.f32 %v2136_v9, %v2569_v39  ;;  %v2138_v32 = vpop.eup %2137  ;;  %vm2642_vm5 = vcmp.eq.f32.partialorder %v1623_v46, 8.507059e+37  ;;  %vm2664_vm8 = vmor %vm1589_vm10, %vm1590_vm3 }
 0x178   : > { %v1572_v15 = vmul.f32 %v2582_v49, %v1571_v63  ;;  %v1601_v2 = vsub.f32 1.0, %v1600_v19  ;;  %2139 = vrcp.f32 %v2589_v52  ;;  %vm1605_vm7 = vweird.f32 %v2134_v3 }
 0x179   : > { %v1558_v21 = vadd.f32 %v2577_v48, %v1557_v12  ;;  %v1587_v14 = vmul.f32 %v2595_v11, %v1586_v16  ;;  %v1616_v36 = vsub.f32 1.0, %v1615_v62  ;;  %vm1620_vm11 = vweird.f32 %v2136_v9  ;;  %vm1606_vm9 = vmor %vm1604_vm13, %vm1605_vm7 }
 0x17a   : > { %v1573_v31 = vadd.f32 %v2582_v49, %v1572_v15  ;;  %v1602_v41 = vmul.f32 %v2134_v3, %v1601_v2  ;;  %v1630_v40 = vmul.f32 %v2138_v32, %v2574_v35  ;;  %v1626_v20 = vor.u32 1.1754944e-38, %v1625_v29  ;;  %vm1621_vm10 = vmor %vm1619_vm15, %vm1620_vm11 }
 0x17b   : > { %v1562_v38 = vsel %vm2638_vm4, %v2577_v48, %v1558_v21  ;;  %v1588_v7 = vadd.f32 %v2595_v11, %v1587_v14  ;;  %v1617_v8 = vmul.f32 %v2136_v9, %v1616_v36  ;;  %v1638_v48 = vand.u32 2147483647, %v2574_v35 }
 0x17c   : > { %v1577_v44 = vsel %vm2654_vm6, %v2582_v49, %v1573_v31  ;;  %v1603_v59 = vadd.f32 %v2134_v3, %v1602_v41  ;;  %v1567_v43 = vsel %vm2602_vm12, %v1566_v10, %v1562_v38  ;;  %v1631_v49 = vsub.f32 1.0, %v1630_v40 }
 0x17d   : > { %v1592_v42 = vsel %vm2664_vm8, %v2595_v11, %v1588_v7  ;;  %v1618_v45 = vadd.f32 %v2136_v9, %v1617_v8  ;;  %v1640_v50 = vand.u32 2147483648, %v2574_v35  ;;  %v1582_v4 = vsel %vm2611_vm14, %v1581_v55, %v1577_v44 }
 0x17e   : > { %v1607_v51 = vsel %vm1606_vm9, %v2134_v3, %v1603_v59  ;;  %vm1635_vm0 = vweird.f32 %v2138_v32  ;;  %2141 = vrcp.f32 %v2597_v57  ;;  %v2140_v53 = vpop.eup %2139  ;;  %v1597_v10 = vsel %vm2619_vm1, %v1596_v13, %v1592_v42 }
 0x17f   : > { %v1612_v47 = vsel %vm2625_vm2, %v1611_v6, %v1607_v51  ;;  %v1622_v56 = vsel %vm1621_vm10, %v2136_v9, %v1618_v45  ;;  %v1632_v11 = vmul.f32 %v2138_v32, %v1631_v49  ;;  %v1645_v55 = vmul.f32 %v2140_v53, %v2589_v52 }
 0x180   : > { %v1627_v39 = vsel %vm2642_vm5, %v1626_v20, %v1622_v56  ;;  %vm1634_vm12 = vweird.f32 %v2574_v35  ;;  %v1674_v60 = vmul.f32 %v1567_v43, %v2534_v24  ;;  %v1675_v61 = vmul.f32 %v1582_v4, %v2536_v25 }
 0x181   : > { %v1633_v58 = vadd.f32 %v2138_v32, %v1632_v11  ;;  %vm1636_vm13 = vmor %vm1634_vm12, %vm1635_vm0  ;;  %v1641_v63 = vor.u32 1.1754944e-38, %v1640_v50  ;;  %v1646_v0 = vsub.f32 1.0, %v1645_v55  ;;  %v1676_v1 = vmul.f32 %v1597_v10, %v2538_v26 }
 0x182   : > { %v1677_v3 = vmul.f32 %v1612_v47, %v2540_v27  ;;  %vm1639_vm14 = vcmp.eq.f32.partialorder %v1638_v48, 8.507059e+37  ;;  %v1655_v54 = vand.u32 2147483648, %v2589_v52  ;;  %v1678_v35 = vmul.f32 %v1627_v39, %v2542_v28  ;;  %1682 = vst [vmem:[%s2691_s6] sm:$0xff] %v1674_v60 }
 0x183   : > { %v1637_v12 = vsel %vm1636_vm13, %v2138_v32, %v1633_v58  ;;  %v1647_v13 = vmul.f32 %v2140_v53, %v1646_v0  ;;  %vm1650_vm15 = vweird.f32 %v2140_v53  ;;  %v1653_v46 = vand.u32 2147483647, %v2589_v52  ;;  %1683 = vst [vmem:[%s2691_s6 + $0x8] sm:$0xff] %v1675_v61 }
 0x184   : > { %v2142_v24 = vpop.eup %2141  ;;  %v1642_v25 = vsel %vm1639_vm14, %v1641_v63, %v1637_v12  ;;  %1684 = vst [vmem:[%s2691_s6 + $0x10] sm:$0xff] %v1676_v1  ;;  %vm1649_vm1 = vweird.f32 %v2589_v52  ;;  %v1656_v28 = vor.u32 1.1754944e-38, %v1655_v54  ;;  %v1670_v17 = vand.u32 2147483648, %v2597_v57 }
 0x185   : > { %v1660_v26 = vmul.f32 %v2142_v24, %v2597_v57  ;;  %v1679_v27 = vmul.f32 %v1642_v25, %v2545_v30  ;;  %v1648_v9 = vadd.f32 %v2140_v53, %v1647_v13  ;;  %1685 = vst [vmem:[%s2691_s6 + $0x18] sm:$0xff] %v1677_v3  ;;  %vm1651_vm2 = vmor %vm1649_vm1, %vm1650_vm15  ;;  %vm1654_vm3 = vcmp.eq.f32.partialorder %v1653_v46, 8.507059e+37 }
 0x186   : > { %1686 = vst [vmem:[%s2691_s6 + $0x20] sm:$0xff] %v1678_v35  ;;  %vm1665_vm4 = vweird.f32 %v2142_v24  ;;  %v1668_v30 = vand.u32 2147483647, %v2597_v57  ;;  %vm1664_vm5 = vweird.f32 %v2597_v57  ;;  %v1671_v62 = vor.u32 1.1754944e-38, %v1670_v17 }
 0x187   : > { %v1661_v15 = vsub.f32 1.0, %v1660_v26  ;;  %v1652_v16 = vsel %vm1651_vm2, %v2140_v53, %v1648_v9  ;;  %1687 = vst [vmem:[%s2691_s6 + $0x28] sm:$0xff] %v1679_v27  ;;  %vm1666_vm6 = vmor %vm1664_vm5, %vm1665_vm4 }
 0x188   : > { %v1657_v19 = vsel %vm1654_vm3, %v1656_v28, %v1652_v16  ;;  %vm1669_vm7 = vcmp.eq.f32.partialorder %v1668_v30, 8.507059e+37 }
 0x189   : > { %v1662_v21 = vmul.f32 %v2142_v24, %v1661_v15  ;;  %v1680_v22 = vmul.f32 %v1657_v19, %v2551_v23 }
 0x18b   : > { %v1663_v52 = vadd.f32 %v2142_v24, %v1662_v21  ;;  %1688 = vst [vmem:[%s2691_s6 + $0x30] sm:$0xff] %v1680_v22 }
 0x18d   : > { %v1667_v29 = vsel %vm1666_vm6, %v2142_v24, %v1663_v52 }
 0x18e   : > { %v1672_v31 = vsel %vm1669_vm7, %v1671_v62, %v1667_v29 }
 0x18f   : > { %v1681_v14 = vmul.f32 %v1672_v31, %v2554_v33 }
 0x191   : > { %1689 = vst [vmem:[%s2691_s6 + $0x38] sm:$0xff] %v1681_v14 }
 0x192 PF: > { %s15_s20 = sadd.s32 1, %s2165_s20   ;;  %s2753_s18 = smov %s2161_s19 }
 0x193   : > { %p12_p5 = scmp.ge.s32.totalorder %s15_s20, 4   ;;  %s2754_s19 = smov %s2756_s21 }
 0x195   :  { %14 = sbr.rel (!%p12_p5) target bundleno = 2 (0x2), region = 95 }

</bundles_post_ra>
